<compile_context>
chip_gen: v7x
topology: tpu7x:2x2x1
jax: 0.10.0
libtpu: 0.0.40
codegen_flags: <defaults>
</compile_context>

<pallas_src>
import numpy as np
import jax
import jax.numpy as jnp
from jax.experimental import pallas as pl
from jax.experimental.pallas import tpu as pltpu

_LOG_2PI = float(np.log(2.0 * np.pi))


def nice_forward_kernel(x_ref, w_in_ref, b_in_ref, w_hid_ref, b_hid_ref,
                        w_out_ref, b_out_ref, log_scale_ref, z_ref, ll_ref):
    """One (TB, D) batch tile through the full NICE stack.

    x_ref:         (TB, D)
    w_in_ref:      (C, D, H)      b_in_ref:  (C, H)      (mask already folded in)
    w_hid_ref:     (C*Lh, H, H)   b_hid_ref: (C*Lh, H)
    w_out_ref:     (C, H, D)      b_out_ref: (C, D)      ((1-mask) already folded in)
    log_scale_ref: (1, D)
    z_ref:         (TB, D)        ll_ref:    (TB, 1)
    """
    z = x_ref[...]
    num_coupling = w_in_ref.shape[0]
    num_hidden_layers = w_hid_ref.shape[0] // num_coupling
    data_dim = z_ref.shape[1]

    # Coupling layers (fully unrolled: layer count is static).
    for c in range(num_coupling):
        # Input weight already mask-scaled:  (mask*z) @ W_in == z @ (mask[:,None]*W_in)
        h = jnp.dot(z, w_in_ref[c], preferred_element_type=jnp.float32)
        h = h + b_in_ref[c:c + 1, :]
        h = jnp.maximum(h, 0.2 * h)                       # LeakyReLU(0.2)
        for l in range(num_hidden_layers):
            idx = c * num_hidden_layers + l
            h = jnp.dot(h, w_hid_ref[idx], preferred_element_type=jnp.float32)
            h = h + b_hid_ref[idx:idx + 1, :]
            h = jnp.maximum(h, 0.2 * h)
        # Output weight/bias already scaled by (1 - mask):
        #   z = z + m(mask*z) * (1 - mask)
        m_x1 = jnp.dot(h, w_out_ref[c], preferred_element_type=jnp.float32)
        z = z + m_x1 + b_out_ref[c:c + 1, :]

    # Scaling layer.
    log_scale = log_scale_ref[...]                        # (1, D)
    z = jnp.exp(log_scale) * z
    log_det_jacobian = jnp.sum(log_scale)

    z_ref[...] = z

    # Gaussian prior log-prob (constant folded at trace time) + logdet.
    log_prob = (-0.5 * jnp.sum(z * z, axis=1, keepdims=True)
                - 0.5 * float(data_dim) * _LOG_2PI)       # (TB, 1)
    ll_ref[...] = log_prob + log_det_jacobian


def nice_forward(x, masks, w_in, b_in, w_hid, b_hid, w_out, b_out, log_scale,
                 *, block_batch=128):
    """NICE forward.  Returns (z, log_likelihood)."""
    N, D = x.shape
    C, _, H = w_in.shape
    Lh = w_hid.shape[0] // C

    # Fold the coupling masks into the weights (one-time host/JAX-side prep).
    one_minus = 1.0 - masks                               # (C, D)
    w_in_m = masks[:, :, None] * w_in                     # (C, D, H)
    w_out_m = w_out * one_minus[:, None, :]               # (C, H, D)
    b_out_m = b_out * one_minus                           # (C, D)

    # Batch tile size: multiple of 8 sublanes; fall back to whole batch.
    TB = block_batch if (N % block_batch == 0) else N
    grid = (N // TB,)

    def resident(*shape):
        # Full-shape block, constant index_map -> stays VMEM-resident.
        return pl.BlockSpec(shape, lambda i, s=shape: (0,) * len(s))

    in_specs = [
        pl.BlockSpec((TB, D), lambda i: (i, 0)),          # x  (pipelined)
        resident(C, D, H), resident(C, H),                # w_in_m, b_in
        resident(C * Lh, H, H), resident(C * Lh, H),      # w_hid, b_hid
        resident(C, H, D), resident(C, D),                # w_out_m, b_out_m
        resident(1, D),                                   # log_scale
    ]
    out_specs = (pl.BlockSpec((TB, D), lambda i: (i, 0)),
                 pl.BlockSpec((TB, 1), lambda i: (i, 0)))
    # TODO(synk): lane-dense (grid, TB) layout for ll would avoid masked
    # vst.msk stores, but the volume is tiny (N*4B) so kept as (TB, 1).

    z, ll = pl.pallas_call(
        nice_forward_kernel,
        out_shape=(jax.ShapeDtypeStruct((N, D), jnp.float32),
                   jax.ShapeDtypeStruct((N, 1), jnp.float32)),
        grid=grid,
        in_specs=in_specs,
        out_specs=out_specs,
        compiler_params=pltpu.CompilerParams(
            dimension_semantics=("parallel",),
            vmem_limit_bytes=32 * 1024 * 1024,
        ),
    )(x, w_in_m, b_in, w_hid, b_hid, w_out_m, b_out_m, log_scale)
    return z, ll[:, 0]


def nice_forward_ref(x, masks, w_in, b_in, w_hid, b_hid, w_out, b_out, log_scale):
    """Pure-JAX reference, using the *original* (unfolded) parameterization."""
    num_coupling = masks.shape[0]
    num_hidden_layers = w_hid.shape[0] // num_coupling
    z = x
    for c in range(num_coupling):
        m = masks[c]
        x1 = z * m
        h = x1 @ w_in[c] + b_in[c]
        h = jnp.where(h > 0.0, h, 0.2 * h)
        for l in range(num_hidden_layers):
            idx = c * num_hidden_layers + l
            h = h @ w_hid[idx] + b_hid[idx]
            h = jnp.where(h > 0.0, h, 0.2 * h)
        mx = h @ w_out[c] + b_out[c]
        z = z + mx * (1.0 - m)
    z = jnp.exp(log_scale) * z
    log_det = jnp.sum(log_scale)
    lp = jnp.sum(-0.5 * z * z - 0.5 * jnp.log(2.0 * jnp.pi), axis=1)
    return z, lp + log_det


def make_params(key, data_dim, hidden_dim, num_coupling_layers, num_net_layers):
    """Deterministic synthetic parameters (PyTorch-Linear-style uniform init)."""
    num_hidden_layers = num_net_layers - 2
    keys = jax.random.split(key, 8)

    def linear_init(k, fan_in, shape):
        bound = 1.0 / np.sqrt(fan_in)
        return jax.random.uniform(k, shape, jnp.float32, -bound, bound)

    w_in = linear_init(keys[0], data_dim, (num_coupling_layers, data_dim, hidden_dim))
    b_in = linear_init(keys[1], data_dim, (num_coupling_layers, hidden_dim))
    w_hid = linear_init(keys[2], hidden_dim,
                        (num_coupling_layers * num_hidden_layers, hidden_dim, hidden_dim))
    b_hid = linear_init(keys[3], hidden_dim,
                        (num_coupling_layers * num_hidden_layers, hidden_dim))
    w_out = linear_init(keys[4], hidden_dim, (num_coupling_layers, hidden_dim, data_dim))
    b_out = linear_init(keys[5], hidden_dim, (num_coupling_layers, data_dim))
    # ScalingLayer: log_scale_vector ~ randn(1, data_dim) (scaled for stability).
    log_scale = jax.random.normal(keys[6], (1, data_dim), jnp.float32) * 0.1

    # Coupling masks: mask[::2] = 1; layers with even index get (1 - mask).
    masks = []
    base = np.zeros(data_dim, dtype=np.float32)
    base[::2] = 1.0
    for i in range(num_coupling_layers):
        masks.append(1.0 - base if (i % 2 == 0) else base)
    masks = jnp.asarray(np.stack(masks, axis=0), dtype=jnp.float32)

    return masks, w_in, b_in, w_hid, b_hid, w_out, b_out, log_scale


if __name__ == "__main__":
    # Small shapes consistent with the module (data_dim even, MLP coupling nets),
    # batch large enough to exercise the batch-tiled grid (4 tiles of 128).
    batch = 512
    data_dim = 16          # even, as asserted by CouplingLayer
    hidden_dim = 32        # stands in for cfg['NUM_HIDDEN_UNITS']
    num_coupling_layers = 3
    num_net_layers = 4     # stands in for cfg['NUM_NET_LAYERS']

    key = jax.random.PRNGKey(0)
    kx, kp = jax.random.split(key)
    x = jax.random.normal(kx, (batch, data_dim), jnp.float32)
    params = make_params(kp, data_dim, hidden_dim, num_coupling_layers, num_net_layers)

    z, log_likelihood = nice_forward(x, *params, block_batch=128)
    z = jax.block_until_ready(z)
    log_likelihood = jax.block_until_ready(log_likelihood)

    z_ref, ll_ref = nice_forward_ref(x, *params)
    np.testing.assert_allclose(np.asarray(z), np.asarray(z_ref), rtol=1e-5, atol=1e-5)
    np.testing.assert_allclose(np.asarray(log_likelihood), np.asarray(ll_ref),
                               rtol=1e-5, atol=1e-5)

    assert z.shape == (batch, data_dim)
    assert log_likelihood.shape == (batch,)
    print("KERNEL_OK")
</pallas_src>

<mosaic_0001>
module attributes {stable_mosaic.version = 11 : i64} {
  func.func @nice_forward_kernel(%arg0: i32, %arg1: memref<128x16xf32, #tpu.memory_space<vmem>>, %arg2: memref<3x16x32xf32, #tpu.memory_space<vmem>>, %arg3: memref<3x32xf32, #tpu.memory_space<vmem>>, %arg4: memref<6x32x32xf32, #tpu.memory_space<vmem>>, %arg5: memref<6x32xf32, #tpu.memory_space<vmem>>, %arg6: memref<3x32x16xf32, #tpu.memory_space<vmem>>, %arg7: memref<3x16xf32, #tpu.memory_space<vmem>>, %arg8: memref<1x16xf32, #tpu.memory_space<vmem>>, %arg9: memref<128x16xf32, #tpu.memory_space<vmem>>, %arg10: memref<128x1xf32, #tpu.memory_space<vmem>>) attributes {dimension_semantics = [#tpu.dimension_semantics<parallel>], iteration_bounds = array<i64: 4>, scalar_prefetch = 0 : i64, scratch_operands = 0 : i64, tpu.core_type = #tpu.core_type<tc>, window_params = [{transform_indices = @transform_0, window_bounds = array<i64: 128, 16>}, {pipeline_mode = #tpu.pipeline_mode<synchronous>, transform_indices = @transform_1, window_bounds = array<i64: 3, 16, 32>}, {pipeline_mode = #tpu.pipeline_mode<synchronous>, transform_indices = @transform_2, window_bounds = array<i64: 3, 32>}, {pipeline_mode = #tpu.pipeline_mode<synchronous>, transform_indices = @transform_3, window_bounds = array<i64: 6, 32, 32>}, {pipeline_mode = #tpu.pipeline_mode<synchronous>, transform_indices = @transform_4, window_bounds = array<i64: 6, 32>}, {pipeline_mode = #tpu.pipeline_mode<synchronous>, transform_indices = @transform_5, window_bounds = array<i64: 3, 32, 16>}, {pipeline_mode = #tpu.pipeline_mode<synchronous>, transform_indices = @transform_6, window_bounds = array<i64: 3, 16>}, {pipeline_mode = #tpu.pipeline_mode<synchronous>, transform_indices = @transform_7, window_bounds = array<i64: 1, 16>}, {transform_indices = @transform_8, window_bounds = array<i64: 128, 16>}, {transform_indices = @transform_9, window_bounds = array<i64: 128, 1>}]} {
    %c0 = arith.constant 0 : index
    %c0_0 = arith.constant 0 : index
    %0 = vector.load %arg1[%c0, %c0_0] : memref<128x16xf32, #tpu.memory_space<vmem>>, vector<128x16xf32>
    %c0_1 = arith.constant 0 : index
    %c0_2 = arith.constant 0 : index
    %c0_3 = arith.constant 0 : index
    %1 = vector.load %arg2[%c0_1, %c0_2, %c0_3] : memref<3x16x32xf32, #tpu.memory_space<vmem>>, vector<1x16x32xf32>
    %2 = vector.shape_cast %1 : vector<1x16x32xf32> to vector<16x32xf32>
    %cst = arith.constant dense<0.000000e+00> : vector<128x32xf32>
    %3 = tpu.matmul %0, %2, %cst {dimension_numbers = #tpu.dot_dimension_numbers<[1], [0], [0], [1], [0, 0, 1, 1], [], []>} : vector<128x16xf32>, vector<16x32xf32>, vector<128x32xf32> -> vector<128x32xf32>
    %c0_4 = arith.constant 0 : index
    %c0_5 = arith.constant 0 : index
    %4 = vector.load %arg3[%c0_4, %c0_5] : memref<3x32xf32, #tpu.memory_space<vmem>>, vector<1x32xf32>
    %5 = vector.broadcast %4 : vector<1x32xf32> to vector<128x32xf32>
    %6 = arith.addf %3, %5 : vector<128x32xf32>
    %cst_6 = arith.constant 2.000000e-01 : f32
    %7 = vector.broadcast %cst_6 : f32 to vector<128x32xf32>
    %8 = arith.mulf %7, %6 : vector<128x32xf32>
    %9 = arith.maximumf %6, %8 : vector<128x32xf32>
    %c0_7 = arith.constant 0 : index
    %c0_8 = arith.constant 0 : index
    %c0_9 = arith.constant 0 : index
    %10 = vector.load %arg4[%c0_7, %c0_8, %c0_9] : memref<6x32x32xf32, #tpu.memory_space<vmem>>, vector<1x32x32xf32>
    %11 = vector.shape_cast %10 : vector<1x32x32xf32> to vector<32x32xf32>
    %cst_10 = arith.constant dense<0.000000e+00> : vector<128x32xf32>
    %12 = tpu.matmul %9, %11, %cst_10 {dimension_numbers = #tpu.dot_dimension_numbers<[1], [0], [0], [1], [0, 0, 1, 1], [], []>} : vector<128x32xf32>, vector<32x32xf32>, vector<128x32xf32> -> vector<128x32xf32>
    %c0_11 = arith.constant 0 : index
    %c0_12 = arith.constant 0 : index
    %13 = vector.load %arg5[%c0_11, %c0_12] : memref<6x32xf32, #tpu.memory_space<vmem>>, vector<1x32xf32>
    %14 = vector.broadcast %13 : vector<1x32xf32> to vector<128x32xf32>
    %15 = arith.addf %12, %14 : vector<128x32xf32>
    %cst_13 = arith.constant 2.000000e-01 : f32
    %16 = vector.broadcast %cst_13 : f32 to vector<128x32xf32>
    %17 = arith.mulf %16, %15 : vector<128x32xf32>
    %18 = arith.maximumf %15, %17 : vector<128x32xf32>
    %c1 = arith.constant 1 : index
    %c0_14 = arith.constant 0 : index
    %c0_15 = arith.constant 0 : index
    %19 = vector.load %arg4[%c1, %c0_14, %c0_15] : memref<6x32x32xf32, #tpu.memory_space<vmem>>, vector<1x32x32xf32>
    %20 = vector.shape_cast %19 : vector<1x32x32xf32> to vector<32x32xf32>
    %cst_16 = arith.constant dense<0.000000e+00> : vector<128x32xf32>
    %21 = tpu.matmul %18, %20, %cst_16 {dimension_numbers = #tpu.dot_dimension_numbers<[1], [0], [0], [1], [0, 0, 1, 1], [], []>} : vector<128x32xf32>, vector<32x32xf32>, vector<128x32xf32> -> vector<128x32xf32>
    %c1_17 = arith.constant 1 : index
    %c0_18 = arith.constant 0 : index
    %22 = vector.load %arg5[%c1_17, %c0_18] : memref<6x32xf32, #tpu.memory_space<vmem>>, vector<1x32xf32>
    %23 = vector.broadcast %22 : vector<1x32xf32> to vector<128x32xf32>
    %24 = arith.addf %21, %23 : vector<128x32xf32>
    %cst_19 = arith.constant 2.000000e-01 : f32
    %25 = vector.broadcast %cst_19 : f32 to vector<128x32xf32>
    %26 = arith.mulf %25, %24 : vector<128x32xf32>
    %27 = arith.maximumf %24, %26 : vector<128x32xf32>
    %c0_20 = arith.constant 0 : index
    %c0_21 = arith.constant 0 : index
    %c0_22 = arith.constant 0 : index
    %28 = vector.load %arg6[%c0_20, %c0_21, %c0_22] : memref<3x32x16xf32, #tpu.memory_space<vmem>>, vector<1x32x16xf32>
    %29 = vector.shape_cast %28 : vector<1x32x16xf32> to vector<32x16xf32>
    %cst_23 = arith.constant dense<0.000000e+00> : vector<128x16xf32>
    %30 = tpu.matmul %27, %29, %cst_23 {dimension_numbers = #tpu.dot_dimension_numbers<[1], [0], [0], [1], [0, 0, 1, 1], [], []>} : vector<128x32xf32>, vector<32x16xf32>, vector<128x16xf32> -> vector<128x16xf32>
    %31 = arith.addf %0, %30 : vector<128x16xf32>
    %c0_24 = arith.constant 0 : index
    %c0_25 = arith.constant 0 : index
    %32 = vector.load %arg7[%c0_24, %c0_25] : memref<3x16xf32, #tpu.memory_space<vmem>>, vector<1x16xf32>
    %33 = vector.broadcast %32 : vector<1x16xf32> to vector<128x16xf32>
    %34 = arith.addf %31, %33 : vector<128x16xf32>
    %c1_26 = arith.constant 1 : index
    %c0_27 = arith.constant 0 : index
    %c0_28 = arith.constant 0 : index
    %35 = vector.load %arg2[%c1_26, %c0_27, %c0_28] : memref<3x16x32xf32, #tpu.memory_space<vmem>>, vector<1x16x32xf32>
    %36 = vector.shape_cast %35 : vector<1x16x32xf32> to vector<16x32xf32>
    %cst_29 = arith.constant dense<0.000000e+00> : vector<128x32xf32>
    %37 = tpu.matmul %34, %36, %cst_29 {dimension_numbers = #tpu.dot_dimension_numbers<[1], [0], [0], [1], [0, 0, 1, 1], [], []>} : vector<128x16xf32>, vector<16x32xf32>, vector<128x32xf32> -> vector<128x32xf32>
    %c1_30 = arith.constant 1 : index
    %c0_31 = arith.constant 0 : index
    %38 = vector.load %arg3[%c1_30, %c0_31] : memref<3x32xf32, #tpu.memory_space<vmem>>, vector<1x32xf32>
    %39 = vector.broadcast %38 : vector<1x32xf32> to vector<128x32xf32>
    %40 = arith.addf %37, %39 : vector<128x32xf32>
    %cst_32 = arith.constant 2.000000e-01 : f32
    %41 = vector.broadcast %cst_32 : f32 to vector<128x32xf32>
    %42 = arith.mulf %41, %40 : vector<128x32xf32>
    %43 = arith.maximumf %40, %42 : vector<128x32xf32>
    %c2 = arith.constant 2 : index
    %c0_33 = arith.constant 0 : index
    %c0_34 = arith.constant 0 : index
    %44 = vector.load %arg4[%c2, %c0_33, %c0_34] : memref<6x32x32xf32, #tpu.memory_space<vmem>>, vector<1x32x32xf32>
    %45 = vector.shape_cast %44 : vector<1x32x32xf32> to vector<32x32xf32>
    %cst_35 = arith.constant dense<0.000000e+00> : vector<128x32xf32>
    %46 = tpu.matmul %43, %45, %cst_35 {dimension_numbers = #tpu.dot_dimension_numbers<[1], [0], [0], [1], [0, 0, 1, 1], [], []>} : vector<128x32xf32>, vector<32x32xf32>, vector<128x32xf32> -> vector<128x32xf32>
    %c2_36 = arith.constant 2 : index
    %c0_37 = arith.constant 0 : index
    %47 = vector.load %arg5[%c2_36, %c0_37] : memref<6x32xf32, #tpu.memory_space<vmem>>, vector<1x32xf32>
    %48 = vector.broadcast %47 : vector<1x32xf32> to vector<128x32xf32>
    %49 = arith.addf %46, %48 : vector<128x32xf32>
    %cst_38 = arith.constant 2.000000e-01 : f32
    %50 = vector.broadcast %cst_38 : f32 to vector<128x32xf32>
    %51 = arith.mulf %50, %49 : vector<128x32xf32>
    %52 = arith.maximumf %49, %51 : vector<128x32xf32>
    %c3 = arith.constant 3 : index
    %c0_39 = arith.constant 0 : index
    %c0_40 = arith.constant 0 : index
    %53 = vector.load %arg4[%c3, %c0_39, %c0_40] : memref<6x32x32xf32, #tpu.memory_space<vmem>>, vector<1x32x32xf32>
    %54 = vector.shape_cast %53 : vector<1x32x32xf32> to vector<32x32xf32>
    %cst_41 = arith.constant dense<0.000000e+00> : vector<128x32xf32>
    %55 = tpu.matmul %52, %54, %cst_41 {dimension_numbers = #tpu.dot_dimension_numbers<[1], [0], [0], [1], [0, 0, 1, 1], [], []>} : vector<128x32xf32>, vector<32x32xf32>, vector<128x32xf32> -> vector<128x32xf32>
    %c3_42 = arith.constant 3 : index
    %c0_43 = arith.constant 0 : index
    %56 = vector.load %arg5[%c3_42, %c0_43] : memref<6x32xf32, #tpu.memory_space<vmem>>, vector<1x32xf32>
    %57 = vector.broadcast %56 : vector<1x32xf32> to vector<128x32xf32>
    %58 = arith.addf %55, %57 : vector<128x32xf32>
    %cst_44 = arith.constant 2.000000e-01 : f32
    %59 = vector.broadcast %cst_44 : f32 to vector<128x32xf32>
    %60 = arith.mulf %59, %58 : vector<128x32xf32>
    %61 = arith.maximumf %58, %60 : vector<128x32xf32>
    %c1_45 = arith.constant 1 : index
    %c0_46 = arith.constant 0 : index
    %c0_47 = arith.constant 0 : index
    %62 = vector.load %arg6[%c1_45, %c0_46, %c0_47] : memref<3x32x16xf32, #tpu.memory_space<vmem>>, vector<1x32x16xf32>
    %63 = vector.shape_cast %62 : vector<1x32x16xf32> to vector<32x16xf32>
    %cst_48 = arith.constant dense<0.000000e+00> : vector<128x16xf32>
    %64 = tpu.matmul %61, %63, %cst_48 {dimension_numbers = #tpu.dot_dimension_numbers<[1], [0], [0], [1], [0, 0, 1, 1], [], []>} : vector<128x32xf32>, vector<32x16xf32>, vector<128x16xf32> -> vector<128x16xf32>
    %65 = arith.addf %34, %64 : vector<128x16xf32>
    %c1_49 = arith.constant 1 : index
    %c0_50 = arith.constant 0 : index
    %66 = vector.load %arg7[%c1_49, %c0_50] : memref<3x16xf32, #tpu.memory_space<vmem>>, vector<1x16xf32>
    %67 = vector.broadcast %66 : vector<1x16xf32> to vector<128x16xf32>
    %68 = arith.addf %65, %67 : vector<128x16xf32>
    %c2_51 = arith.constant 2 : index
    %c0_52 = arith.constant 0 : index
    %c0_53 = arith.constant 0 : index
    %69 = vector.load %arg2[%c2_51, %c0_52, %c0_53] : memref<3x16x32xf32, #tpu.memory_space<vmem>>, vector<1x16x32xf32>
    %70 = vector.shape_cast %69 : vector<1x16x32xf32> to vector<16x32xf32>
    %cst_54 = arith.constant dense<0.000000e+00> : vector<128x32xf32>
    %71 = tpu.matmul %68, %70, %cst_54 {dimension_numbers = #tpu.dot_dimension_numbers<[1], [0], [0], [1], [0, 0, 1, 1], [], []>} : vector<128x16xf32>, vector<16x32xf32>, vector<128x32xf32> -> vector<128x32xf32>
    %c2_55 = arith.constant 2 : index
    %c0_56 = arith.constant 0 : index
    %72 = vector.load %arg3[%c2_55, %c0_56] : memref<3x32xf32, #tpu.memory_space<vmem>>, vector<1x32xf32>
    %73 = vector.broadcast %72 : vector<1x32xf32> to vector<128x32xf32>
    %74 = arith.addf %71, %73 : vector<128x32xf32>
    %cst_57 = arith.constant 2.000000e-01 : f32
    %75 = vector.broadcast %cst_57 : f32 to vector<128x32xf32>
    %76 = arith.mulf %75, %74 : vector<128x32xf32>
    %77 = arith.maximumf %74, %76 : vector<128x32xf32>
    %c4 = arith.constant 4 : index
    %c0_58 = arith.constant 0 : index
    %c0_59 = arith.constant 0 : index
    %78 = vector.load %arg4[%c4, %c0_58, %c0_59] : memref<6x32x32xf32, #tpu.memory_space<vmem>>, vector<1x32x32xf32>
    %79 = vector.shape_cast %78 : vector<1x32x32xf32> to vector<32x32xf32>
    %cst_60 = arith.constant dense<0.000000e+00> : vector<128x32xf32>
    %80 = tpu.matmul %77, %79, %cst_60 {dimension_numbers = #tpu.dot_dimension_numbers<[1], [0], [0], [1], [0, 0, 1, 1], [], []>} : vector<128x32xf32>, vector<32x32xf32>, vector<128x32xf32> -> vector<128x32xf32>
    %c4_61 = arith.constant 4 : index
    %c0_62 = arith.constant 0 : index
    %81 = vector.load %arg5[%c4_61, %c0_62] : memref<6x32xf32, #tpu.memory_space<vmem>>, vector<1x32xf32>
    %82 = vector.broadcast %81 : vector<1x32xf32> to vector<128x32xf32>
    %83 = arith.addf %80, %82 : vector<128x32xf32>
    %cst_63 = arith.constant 2.000000e-01 : f32
    %84 = vector.broadcast %cst_63 : f32 to vector<128x32xf32>
    %85 = arith.mulf %84, %83 : vector<128x32xf32>
    %86 = arith.maximumf %83, %85 : vector<128x32xf32>
    %c5 = arith.constant 5 : index
    %c0_64 = arith.constant 0 : index
    %c0_65 = arith.constant 0 : index
    %87 = vector.load %arg4[%c5, %c0_64, %c0_65] : memref<6x32x32xf32, #tpu.memory_space<vmem>>, vector<1x32x32xf32>
    %88 = vector.shape_cast %87 : vector<1x32x32xf32> to vector<32x32xf32>
    %cst_66 = arith.constant dense<0.000000e+00> : vector<128x32xf32>
    %89 = tpu.matmul %86, %88, %cst_66 {dimension_numbers = #tpu.dot_dimension_numbers<[1], [0], [0], [1], [0, 0, 1, 1], [], []>} : vector<128x32xf32>, vector<32x32xf32>, vector<128x32xf32> -> vector<128x32xf32>
    %c5_67 = arith.constant 5 : index
    %c0_68 = arith.constant 0 : index
    %90 = vector.load %arg5[%c5_67, %c0_68] : memref<6x32xf32, #tpu.memory_space<vmem>>, vector<1x32xf32>
    %91 = vector.broadcast %90 : vector<1x32xf32> to vector<128x32xf32>
    %92 = arith.addf %89, %91 : vector<128x32xf32>
    %cst_69 = arith.constant 2.000000e-01 : f32
    %93 = vector.broadcast %cst_69 : f32 to vector<128x32xf32>
    %94 = arith.mulf %93, %92 : vector<128x32xf32>
    %95 = arith.maximumf %92, %94 : vector<128x32xf32>
    %c2_70 = arith.constant 2 : index
    %c0_71 = arith.constant 0 : index
    %c0_72 = arith.constant 0 : index
    %96 = vector.load %arg6[%c2_70, %c0_71, %c0_72] : memref<3x32x16xf32, #tpu.memory_space<vmem>>, vector<1x32x16xf32>
    %97 = vector.shape_cast %96 : vector<1x32x16xf32> to vector<32x16xf32>
    %cst_73 = arith.constant dense<0.000000e+00> : vector<128x16xf32>
    %98 = tpu.matmul %95, %97, %cst_73 {dimension_numbers = #tpu.dot_dimension_numbers<[1], [0], [0], [1], [0, 0, 1, 1], [], []>} : vector<128x32xf32>, vector<32x16xf32>, vector<128x16xf32> -> vector<128x16xf32>
    %99 = arith.addf %68, %98 : vector<128x16xf32>
    %c2_74 = arith.constant 2 : index
    %c0_75 = arith.constant 0 : index
    %100 = vector.load %arg7[%c2_74, %c0_75] : memref<3x16xf32, #tpu.memory_space<vmem>>, vector<1x16xf32>
    %101 = vector.broadcast %100 : vector<1x16xf32> to vector<128x16xf32>
    %102 = arith.addf %99, %101 : vector<128x16xf32>
    %c0_76 = arith.constant 0 : index
    %c0_77 = arith.constant 0 : index
    %103 = vector.load %arg8[%c0_76, %c0_77] : memref<1x16xf32, #tpu.memory_space<vmem>>, vector<1x16xf32>
    %104 = math.exp %103 : vector<1x16xf32>
    %105 = vector.broadcast %104 : vector<1x16xf32> to vector<128x16xf32>
    %106 = arith.mulf %105, %102 : vector<128x16xf32>
    %107 = vector.shape_cast %103 : vector<1x16xf32> to vector<1x1x16xf32>
    %cst_78 = arith.constant dense<0.000000e+00> : vector<1xf32>
    %108 = vector.multi_reduction <add>, %107, %cst_78 [1, 2] : vector<1x1x16xf32> to vector<1xf32>
    %109 = vector.shape_cast %108 : vector<1xf32> to vector<1x1x1xf32>
    %110 = vector.extract %109[0, 0, 0] : f32 from vector<1x1x1xf32>
    %c0_79 = arith.constant 0 : index
    %c0_80 = arith.constant 0 : index
    %111 = vector.load %arg9[%c0_79, %c0_80] : memref<128x16xf32, #tpu.memory_space<vmem>>, vector<128x16xf32>
    tpu.vector_store %arg9[%c0_79, %c0_80], %106 {strides = array<i32>} : memref<128x16xf32, #tpu.memory_space<vmem>>, vector<128x16xf32>,
    %112 = arith.mulf %106, %106 : vector<128x16xf32>
    %cst_81 = arith.constant dense<0.000000e+00> : vector<128xf32>
    %113 = vector.multi_reduction <add>, %112, %cst_81 [1] : vector<128x16xf32> to vector<128xf32>
    %114 = vector.shape_cast %113 : vector<128xf32> to vector<128x1xf32>
    %cst_82 = arith.constant -5.000000e-01 : f32
    %115 = vector.broadcast %cst_82 : f32 to vector<128x1xf32>
    %116 = arith.mulf %115, %114 : vector<128x1xf32>
    %cst_83 = arith.constant 14.7030163 : f32
    %117 = vector.broadcast %cst_83 : f32 to vector<128x1xf32>
    %118 = arith.subf %116, %117 : vector<128x1xf32>
    %119 = vector.broadcast %110 : f32 to vector<128x1xf32>
    %120 = arith.addf %118, %119 : vector<128x1xf32>
    %c0_84 = arith.constant 0 : index
    %c0_85 = arith.constant 0 : index
    %121 = vector.load %arg10[%c0_84, %c0_85] : memref<128x1xf32, #tpu.memory_space<vmem>>, vector<128x1xf32>
    tpu.vector_store %arg10[%c0_84, %c0_85], %120 {strides = array<i32>} : memref<128x1xf32, #tpu.memory_space<vmem>>, vector<128x1xf32>,
    return
  }
  func.func @transform_0(%arg0: i32) -> (i32, i32) {
    %c0_i32 = arith.constant 0 : i32
    %c0_i32_0 = arith.constant 0 : i32
    return %arg0, %c0_i32 : i32, i32
  }
  func.func @transform_1(%arg0: i32) -> (i32, i32, i32) {
    %c0_i32 = arith.constant 0 : i32
    %c0_i32_0 = arith.constant 0 : i32
    %c0_i32_1 = arith.constant 0 : i32
    %c0_i32_2 = arith.constant 0 : i32
    return %c0_i32, %c0_i32_0, %c0_i32_1 : i32, i32, i32
  }
  func.func @transform_2(%arg0: i32) -> (i32, i32) {
    %c0_i32 = arith.constant 0 : i32
    %c0_i32_0 = arith.constant 0 : i32
    %c0_i32_1 = arith.constant 0 : i32
    return %c0_i32, %c0_i32_0 : i32, i32
  }
  func.func @transform_3(%arg0: i32) -> (i32, i32, i32) {
    %c0_i32 = arith.constant 0 : i32
    %c0_i32_0 = arith.constant 0 : i32
    %c0_i32_1 = arith.constant 0 : i32
    %c0_i32_2 = arith.constant 0 : i32
    return %c0_i32, %c0_i32_0, %c0_i32_1 : i32, i32, i32
  }
  func.func @transform_4(%arg0: i32) -> (i32, i32) {
    %c0_i32 = arith.constant 0 : i32
    %c0_i32_0 = arith.constant 0 : i32
    %c0_i32_1 = arith.constant 0 : i32
    return %c0_i32, %c0_i32_0 : i32, i32
  }
  func.func @transform_5(%arg0: i32) -> (i32, i32, i32) {
    %c0_i32 = arith.constant 0 : i32
    %c0_i32_0 = arith.constant 0 : i32
    %c0_i32_1 = arith.constant 0 : i32
    %c0_i32_2 = arith.constant 0 : i32
    return %c0_i32, %c0_i32_0, %c0_i32_1 : i32, i32, i32
  }
  func.func @transform_6(%arg0: i32) -> (i32, i32) {
    %c0_i32 = arith.constant 0 : i32
    %c0_i32_0 = arith.constant 0 : i32
    %c0_i32_1 = arith.constant 0 : i32
    return %c0_i32, %c0_i32_0 : i32, i32
  }
  func.func @transform_7(%arg0: i32) -> (i32, i32) {
    %c0_i32 = arith.constant 0 : i32
    %c0_i32_0 = arith.constant 0 : i32
    %c0_i32_1 = arith.constant 0 : i32
    return %c0_i32, %c0_i32_0 : i32, i32
  }
  func.func @transform_8(%arg0: i32) -> (i32, i32) {
    %c0_i32 = arith.constant 0 : i32
    %c0_i32_0 = arith.constant 0 : i32
    return %arg0, %c0_i32 : i32, i32
  }
  func.func @transform_9(%arg0: i32) -> (i32, i32) {
    %c0_i32 = arith.constant 0 : i32
    %c0_i32_0 = arith.constant 0 : i32
    return %arg0, %c0_i32 : i32, i32
  }
}

</mosaic_0001>

<bundles_post_ra>
// kernel: tpu_custom_call.1
= control target key start
LH: loop header
LB: loop body
LE: loop exit
PB: predicated region body
PF: predicated region fallthrough
CT: control target
= control target key end

     0   :  { %s4476_s30 = smov 0   ;;  %s5372_s0 = inlined_call_operand.vmem [shape: f32[512,16], index: 0, kind: input, shape index: {}]   ;;  %s5373_s1 = inlined_call_operand.vmem [shape: f32[3,16,32], index: 1, kind: input, shape index: {}]   ;;  %s5374_s2 = inlined_call_operand.vmem [shape: f32[3,32], index: 2, kind: input, shape index: {}]   ;;  %s5375_s3 = inlined_call_operand.vmem [shape: f32[6,32,32], index: 3, kind: input, shape index: {}]   ;;  %s5376_s4 = inlined_call_operand.vmem [shape: f32[6,32], index: 4, kind: input, shape index: {}]   ;;  %s5377_s5 = inlined_call_operand.vmem [shape: f32[3,32,16], index: 5, kind: input, shape index: {}]   ;;  %s5378_s6 = inlined_call_operand.vmem [shape: f32[3,16], index: 6, kind: input, shape index: {}]   ;;  %s5379_s7 = inlined_call_operand.vmem [shape: f32[1,16], index: 7, kind: input, shape index: {}]   ;;  %s5380_s8 = inlined_call_operand.vmem [shape: f32[512,16], index: 8, kind: output, shape index: {0}]   ;;  %s5381_s9 = inlined_call_operand.vmem [shape: f32[512,1], index: 9, kind: output, shape index: {1}]  }
   0x1 LB: > { %s3451_s10 = sadd.s32 4294967295, %s4424_s30   ;;  %p3455_p0 = scmp.ge.s32.totalorder %s4424_s30, 1  ;;  %s4424_s30 = sphi %s4476_s30, %s20_s30  }
   0x2   : > { %p291_p1 = scmp.lt.s32.totalorder %s4424_s30, 5 }
   0x4   : > { %p292_p2 = pnand %p3455_p0, %p291_p1 }
   0x5   : > { %v366_v0 = vld [vmem:[%s5373_s1] sm:$0xff] (!%p292_p2)  ;;  %v367_v1 = vld [vmem:[%s5373_s1 + $0x8] sm:$0xff] (!%p292_p2)  ;;  %s3456_s15 = sshll.u32 (!%p292_p2), %s3451_s10, 4  ;;  %vm373_vm0 = vcmask (!%p292_p2), 130048   ;;  %v601_v22 = vld [vmem:[%s5375_s3 + $0x10] sm:$0xff] (!%p292_p2)  ;;  %vm608_vm1 = vcmask (!%p292_p2), 261120  }
   0x6   : > { %295 = sbr.rel (%p292_p2) target bundleno = 2833 (0xb11), region = 52  ;;  %v4322_v2 = vpack.c.bf16 (!%p292_p2), %v367_v1, %v366_v0  ;;  %p333_p3 = scmp.lt.s32.totalorder (!%p292_p2), %s3456_s15, 63  ;;  %v599_v19 = vld [vmem:[%s5375_s3] sm:$0xff] (!%p292_p2)  ;;  %v600_v20 = vld [vmem:[%s5375_s3 + $0x8] sm:$0xff] (!%p292_p2)  ;;  %v602_v23 = vld [vmem:[%s5375_s3 + $0x18] sm:$0xff] (!%p292_p2)  ;;  %vm3204_vm2 = vcmask (!%p292_p2), 122880  }
   0x7   : > { %v4326_v21 = vpack.c.bf16 (!%p292_p2), %v600_v20, %v599_v19  ;;  %v4330_v24 = vpack.c.bf16 (!%p292_p2), %v602_v23, %v601_v22  ;;  %v3496_v25 = vld [vmem:[%s5375_s3 + $0x20] sm:$0xff] (!%p292_p2)  ;;  %v3497_v26 = vld [vmem:[%s5375_s3 + $0x28] sm:$0xff] (!%p292_p2)  ;;  %v3498_v27 = vld [vmem:[%s5375_s3 + $0x30] sm:$0xff] (!%p292_p2)  ;;  %vm3344_vm3 = vcmask (!%p292_p2), 7168  }
   0x8   : > { %4323 = vmatprep.subr.bf16.mxu0 (!%p292_p2), %v4322_v2  ;;  %v4334_v28 = vpack.c.bf16 (!%p292_p2), %v3497_v26, %v3496_v25  ;;  %v3499_v29 = vld [vmem:[%s5375_s3 + $0x38] sm:$0xff] (!%p292_p2)  ;;  %v4605_v31 = vld [vmem:[%s5374_s2] ss:$0 sm:$0xff] (!%p292_p2) }
   0x9   : > { %4325 = vmatpush3.bf16.msra.mxu0 (!%p292_p2), %v4322_v2  ;;  %4327 = vmatprep.subr.bf16.mxu1 (!%p292_p2), %v4326_v21  ;;  %v4338_v30 = vpack.c.bf16 (!%p292_p2), %v3499_v29, %v3498_v27 }
   0xa   : > { %4329 = vmatpush3.bf16.msra.mxu1 (!%p292_p2), %v4326_v21  ;;  %4335 = vmatprep.subr.bf16.mxu0 (!%p292_p2), %v4334_v28 }
   0xb   : > { %4331 = vmatprep.subr.bf16.mxu1 (!%p292_p2), %v4330_v24 }
   0xd   : > { %s5383_s15 = smov (!%p333_p3, %s3456_s15), 63 }
   0xe   : > { %s4490_s16 = sshll.u32 %s5383_s15, 3  ;;  %4333 = vmatpush3.bf16.msra.mxu1 %v4330_v24 }
   0xf   : > { %s4496_s19 = scalar_lea.vmem %s5372_s0, %s4490_s16  ;;  %s5218_s13 = scalar_lea.vmem %s5380_s8, %s4490_s16 }
  0x10   : > { %v4499_v3 = vld [vmem:[%s4496_s19] sm:$0xff]  ;;  %v4502_v4 = vld [vmem:[%s4496_s19 + $0x8] sm:$0xff]  ;;  %v4505_v5 = vld [vmem:[%s4496_s19 + $0x10] sm:$0xff]  ;;  %s5319_s18 = scalar_lea.vmem %s5381_s9, %s4490_s16 }
  0x11   : > { %3954 = vmatprep.mubr.msk.f32.mxu0 %vm373_vm0, %v4499_v3  ;;  %v4514_v6 = vld [vmem:[%s4496_s19 + $0x18] sm:$0xff]  ;;  %v4517_v7 = vld [vmem:[%s4496_s19 + $0x20] sm:$0xff]  ;;  %v4524_v8 = vld [vmem:[%s4496_s19 + $0x28] sm:$0xff] }
  0x12   : > { %3955 = vmatmul.mubr.msk.f32.vlgmr.msra.gmra.mrb[0].mxu0 %vm373_vm0, %v4502_v4  ;;  %v4527_v9 = vld [vmem:[%s4496_s19 + $0x30] sm:$0xff]  ;;  %v4534_v10 = vld [vmem:[%s4496_s19 + $0x38] sm:$0xff]  ;;  %v4537_v11 = vld [vmem:[%s4496_s19 + $0x40] sm:$0xff] }
  0x13   : > { %3957 = vmatprep.mubr.msk.f32.mxu0 %vm373_vm0, %v4505_v5  ;;  %v4544_v12 = vld [vmem:[%s4496_s19 + $0x48] sm:$0xff]  ;;  %v4547_v13 = vld [vmem:[%s4496_s19 + $0x50] sm:$0xff]  ;;  %v4554_v14 = vld [vmem:[%s4496_s19 + $0x58] sm:$0xff]  ;;  %4337 = vmatpush3.bf16.msra.mxu0 %v4334_v28 }
  0x14   : > { %v4557_v15 = vld [vmem:[%s4496_s19 + $0x60] sm:$0xff]  ;;  %v4564_v16 = vld [vmem:[%s4496_s19 + $0x68] sm:$0xff]  ;;  %v4567_v17 = vld [vmem:[%s4496_s19 + $0x70] sm:$0xff]  ;;  %4339 = vmatprep.subr.bf16.mxu0 %v4338_v30 }
  0x15   : > { %v4574_v18 = vld [vmem:[%s4496_s19 + $0x78] sm:$0xff] }
  0x16   : > { %3958 = vmatmul.mubr.msk.f32.gmra.mrb[2].mxu0 %vm373_vm0, %v4514_v6 }
  0x17   : > { %3960 = vmatprep.mubr.msk.f32.mxu0 %vm373_vm0, %v4517_v7  ;;  %4341 = vmatpush3.bf16.msra.mxu0 %v4338_v30 }
  0x1a   : > { %3961 = vmatmul.mubr.msk.f32.gmra.mrb[4].mxu0 %vm373_vm0, %v4524_v8 }
  0x1b   : > { %3963 = vmatprep.mubr.msk.f32.mxu0 %vm373_vm0, %v4527_v9 }
  0x1e   : > { %3964 = vmatmul.mubr.msk.f32.gmra.mrb[6].mxu0 %vm373_vm0, %v4534_v10 }
  0x1f   : > { %3966 = vmatprep.mubr.msk.f32.mxu0 %vm373_vm0, %v4537_v11 }
  0x22   : > { %3967 = vmatmul.mubr.msk.f32.gmra.mrb[8].mxu0 %vm373_vm0, %v4544_v12 }
  0x23   : > { %3969 = vmatprep.mubr.msk.f32.mxu0 %vm373_vm0, %v4547_v13 }
  0x26   : > { %3970 = vmatmul.mubr.msk.f32.gmra.mrb[10].mxu0 %vm373_vm0, %v4554_v14 }
  0x27   : > { %3972 = vmatprep.mubr.msk.f32.mxu0 %vm373_vm0, %v4557_v15 }
  0x2a   : > { %3973 = vmatmul.mubr.msk.f32.gmra.mrb[12].mxu0 %vm373_vm0, %v4564_v16 }
  0x2b   : > { %3975 = vmatprep.mubr.msk.f32.mxu0 %vm373_vm0, %v4567_v17 }
  0x2e   : > { %3976 = vmatmul.mubr.msk.f32.gmra.mrb[14].mxu0 %vm373_vm0, %v4574_v18 }
  0xe5   : > { %v3956_v32 = vpop.f32.mrb[0].mxu0 }
  0xe6   : > { %v494_v33 = vadd.f32 %v3956_v32, %v4605_v31  ;;  %v488_v34 = vpop.f32.mrb[1].mxu0 }
  0xe7   : > { %v489_v35 = vadd.f32 %v4605_v31, %v488_v34 }
  0xe8   : > { %v568_v36 = vmul.f32 0.2, %v494_v33 }
  0xe9   : > { %v567_v37 = vmul.f32 0.2, %v489_v35  ;;  %v3959_v38 = vpop.f32.mrb[2].mxu0 }
  0xea   : > { %v504_v39 = vadd.f32 %v3959_v38, %v4605_v31  ;;  %v498_v40 = vpop.f32.mrb[3].mxu0  ;;  %v584_v43 = vmax.f32 %v494_v33, %v568_v36 }
  0xeb   : > { %v499_v41 = vadd.f32 %v4605_v31, %v498_v40  ;;  %v583_v42 = vmax.f32 %v489_v35, %v567_v37 }
  0xec   : > { %v570_v44 = vmul.f32 0.2, %v504_v39 }
  0xed   : > { %v569_v45 = vmul.f32 0.2, %v499_v41  ;;  %v3962_v46 = vpop.f32.mrb[4].mxu0  ;;  %3986 = vmatprep.mubr.msk.f32.mxu1 %vm608_vm1, %v583_v42 }
  0xee   : > { %v514_v47 = vadd.f32 %v3962_v46, %v4605_v31  ;;  %v508_v48 = vpop.f32.mrb[5].mxu0  ;;  %3987 = vmatmul.mubr.msk.f32.vlgmr.msra.gmra.mrb[0].mxu1 %vm608_vm1, %v584_v43  ;;  %v586_v51 = vmax.f32 %v504_v39, %v570_v44 }
  0xef   : > { %v585_v49 = vmax.f32 %v499_v41, %v569_v45  ;;  %v509_v50 = vadd.f32 %v4605_v31, %v508_v48 }
  0xf0   : > { %v572_v52 = vmul.f32 0.2, %v514_v47 }
  0xf1   : > { %v571_v53 = vmul.f32 0.2, %v509_v50  ;;  %v3965_v54 = vpop.f32.mrb[6].mxu0  ;;  %3989 = vmatprep.mubr.msk.f32.mxu1 %vm608_vm1, %v585_v49  ;;  %v1069_v49 = vld [vmem:[%s5377_s5] sm:$0xff] }
  0xf2   : > { %v524_v55 = vadd.f32 %v3965_v54, %v4605_v31  ;;  %v518_v56 = vpop.f32.mrb[7].mxu0  ;;  %3990 = vmatmul.mubr.msk.f32.gmra.mrb[2].mxu1 %vm608_vm1, %v586_v51  ;;  %v588_v59 = vmax.f32 %v514_v47, %v572_v52  ;;  %v1072_v52 = vld [vmem:[%s5377_s5 + $0x18] sm:$0xff]  ;;  %v4654_v54 = vld [vmem:[%s5376_s4] ss:$0 sm:$0xff] }
  0xf3   : > { %v587_v57 = vmax.f32 %v509_v50, %v571_v53  ;;  %v519_v58 = vadd.f32 %v4605_v31, %v518_v56  ;;  %v1071_v50 = vld [vmem:[%s5377_s5 + $0x10] sm:$0xff] }
  0xf4   : > { %v574_v60 = vmul.f32 0.2, %v524_v55  ;;  %v4346_v53 = vpack.c.bf16 %v1072_v52, %v1071_v50 }
  0xf5   : > { %v573_v61 = vmul.f32 0.2, %v519_v58  ;;  %v3968_v62 = vpop.f32.mrb[8].mxu0  ;;  %3992 = vmatprep.mubr.msk.f32.mxu1 %vm608_vm1, %v587_v57 }
  0xf6   : > { %v534_v63 = vadd.f32 %v3968_v62, %v4605_v31  ;;  %v528_v0 = vpop.f32.mrb[9].mxu0  ;;  %3993 = vmatmul.mubr.msk.f32.gmra.mrb[4].mxu1 %vm608_vm1, %v588_v59  ;;  %v590_v19 = vmax.f32 %v524_v55, %v574_v60 }
  0xf7   : > { %v589_v1 = vmax.f32 %v519_v58, %v573_v61  ;;  %v529_v2 = vadd.f32 %v4605_v31, %v528_v0 }
  0xf8   : > { %v576_v20 = vmul.f32 0.2, %v534_v63 }
  0xf9   : > { %v575_v21 = vmul.f32 0.2, %v529_v2  ;;  %v3971_v22 = vpop.f32.mrb[10].mxu0  ;;  %3995 = vmatprep.mubr.msk.f32.mxu1 %vm608_vm1, %v589_v1 }
  0xfa   : > { %v544_v23 = vadd.f32 %v3971_v22, %v4605_v31  ;;  %v538_v24 = vpop.f32.mrb[11].mxu0  ;;  %3996 = vmatmul.mubr.msk.f32.gmra.mrb[6].mxu1 %vm608_vm1, %v590_v19  ;;  %v592_v27 = vmax.f32 %v534_v63, %v576_v20 }
  0xfb   : > { %v591_v25 = vmax.f32 %v529_v2, %v575_v21  ;;  %v539_v26 = vadd.f32 %v4605_v31, %v538_v24 }
  0xfc   : > { %v578_v28 = vmul.f32 0.2, %v544_v23 }
  0xfd   : > { %v577_v29 = vmul.f32 0.2, %v539_v26  ;;  %v3974_v30 = vpop.f32.mrb[12].mxu0  ;;  %3998 = vmatprep.mubr.msk.f32.mxu1 %vm608_vm1, %v591_v25 }
  0xfe   : > { %v554_v32 = vadd.f32 %v3974_v30, %v4605_v31  ;;  %v548_v33 = vpop.f32.mrb[13].mxu0  ;;  %3999 = vmatmul.mubr.msk.f32.gmra.mrb[8].mxu1 %vm608_vm1, %v592_v27  ;;  %v594_v36 = vmax.f32 %v544_v23, %v578_v28 }
  0xff   : > { %v593_v34 = vmax.f32 %v539_v26, %v577_v29  ;;  %v549_v35 = vadd.f32 %v4605_v31, %v548_v33 }
 0x100   : > { %v580_v37 = vmul.f32 0.2, %v554_v32 }
 0x101   : > { %v579_v38 = vmul.f32 0.2, %v549_v35  ;;  %v3977_v39 = vpop.f32.mrb[14].mxu0  ;;  %4001 = vmatprep.mubr.msk.f32.mxu1 %vm608_vm1, %v593_v34 }
 0x102   : > { %v564_v40 = vadd.f32 %v3977_v39, %v4605_v31  ;;  %v558_v41 = vpop.f32.mrb[15].mxu0  ;;  %4002 = vmatmul.mubr.msk.f32.gmra.mrb[10].mxu1 %vm608_vm1, %v594_v36  ;;  %v596_v44 = vmax.f32 %v554_v32, %v580_v37 }
 0x103   : > { %v595_v42 = vmax.f32 %v549_v35, %v579_v38  ;;  %v559_v43 = vadd.f32 %v4605_v31, %v558_v41  ;;  %v1070_v31 = vld [vmem:[%s5377_s5 + $0x8] sm:$0xff] }
 0x104   : > { %v582_v45 = vmul.f32 0.2, %v564_v40  ;;  %v4342_v51 = vpack.c.bf16 %v1070_v31, %v1069_v49 }
 0x105   : > { %v581_v46 = vmul.f32 0.2, %v559_v43  ;;  %4004 = vmatprep.mubr.msk.f32.mxu1 %vm608_vm1, %v595_v42 }
 0x106   : > { %4005 = vmatmul.mubr.msk.f32.gmra.mrb[12].mxu1 %vm608_vm1, %v596_v44  ;;  %v598_v48 = vmax.f32 %v564_v40, %v582_v45  ;;  %4343 = vmatprep.subr.bf16.mxu1 %v4342_v51 }
 0x107   : > { %v597_v47 = vmax.f32 %v559_v43, %v581_v46  ;;  %4345 = vmatpush3.bf16.msra.mxu1 %v4342_v51 }
 0x108   : > { %4347 = vmatprep.subr.bf16.mxu1 %v4346_v53 }
 0x109   : > { %4007 = vmatprep.mubr.msk.f32.mxu1 %vm608_vm1, %v597_v47 }
 0x10a   : > { %4008 = vmatmul.mubr.msk.f32.gmra.mrb[14].mxu1 %vm608_vm1, %v598_v48 }
 0x10b   : > { %4349 = vmatpush3.bf16.msra.mxu1 %v4346_v53 }
 0x1c1   : > { %v3988_v55 = vpop.f32.mrb[0].mxu1 }
 0x1c2   : > { %v729_v56 = vadd.f32 %v3988_v55, %v4654_v54  ;;  %v723_v57 = vpop.f32.mrb[1].mxu1 }
 0x1c3   : > { %v724_v58 = vadd.f32 %v4654_v54, %v723_v57 }
 0x1c4   : > { %v803_v59 = vmul.f32 0.2, %v729_v56 }
 0x1c5   : > { %v802_v60 = vmul.f32 0.2, %v724_v58  ;;  %v3991_v61 = vpop.f32.mrb[2].mxu1 }
 0x1c6   : > { %v739_v62 = vadd.f32 %v3991_v61, %v4654_v54  ;;  %v733_v63 = vpop.f32.mrb[3].mxu1  ;;  %v819_v2 = vmax.f32 %v729_v56, %v803_v59 }
 0x1c7   : > { %v818_v0 = vmax.f32 %v724_v58, %v802_v60  ;;  %v734_v1 = vadd.f32 %v4654_v54, %v733_v63 }
 0x1c8   : > { %v805_v19 = vmul.f32 0.2, %v739_v62 }
 0x1c9   : > { %v804_v20 = vmul.f32 0.2, %v734_v1  ;;  %v3994_v21 = vpop.f32.mrb[4].mxu1  ;;  %4018 = vmatprep.mubr.msk.f32.mxu0 %vm608_vm1, %v818_v0 }
 0x1ca   : > { %v749_v22 = vadd.f32 %v3994_v21, %v4654_v54  ;;  %v743_v23 = vpop.f32.mrb[5].mxu1  ;;  %4019 = vmatmul.mubr.msk.f32.vlgmr.msra.gmra.mrb[16].mxu0 %vm608_vm1, %v819_v2  ;;  %v821_v26 = vmax.f32 %v739_v62, %v805_v19 }
 0x1cb   : > { %v820_v24 = vmax.f32 %v734_v1, %v804_v20  ;;  %v744_v25 = vadd.f32 %v4654_v54, %v743_v23 }
 0x1cc   : > { %v807_v27 = vmul.f32 0.2, %v749_v22 }
 0x1cd   : > { %v806_v28 = vmul.f32 0.2, %v744_v25  ;;  %v3997_v29 = vpop.f32.mrb[6].mxu1  ;;  %4021 = vmatprep.mubr.msk.f32.mxu0 %vm608_vm1, %v820_v24  ;;  %v3534_v24 = vld [vmem:[%s5373_s1 + $0x10] sm:$0xff] }
 0x1ce   : > { %v759_v30 = vadd.f32 %v3997_v29, %v4654_v54  ;;  %v753_v32 = vpop.f32.mrb[7].mxu1  ;;  %4022 = vmatmul.mubr.msk.f32.gmra.mrb[18].mxu0 %vm608_vm1, %v821_v26  ;;  %v823_v35 = vmax.f32 %v749_v22, %v807_v27  ;;  %v4697_v26 = vld [vmem:[%s5376_s4 + $0x1] ss:$0 sm:$0xff] }
 0x1cf   : > { %v822_v33 = vmax.f32 %v744_v25, %v806_v28  ;;  %v754_v34 = vadd.f32 %v4654_v54, %v753_v32 }
 0x1d0   : > { %v809_v36 = vmul.f32 0.2, %v759_v30 }
 0x1d1   : > { %v808_v37 = vmul.f32 0.2, %v754_v34  ;;  %v4000_v38 = vpop.f32.mrb[8].mxu1  ;;  %4024 = vmatprep.mubr.msk.f32.mxu0 %vm608_vm1, %v822_v33 }
 0x1d2   : > { %v769_v39 = vadd.f32 %v4000_v38, %v4654_v54  ;;  %v763_v40 = vpop.f32.mrb[9].mxu1  ;;  %4025 = vmatmul.mubr.msk.f32.gmra.mrb[20].mxu0 %vm608_vm1, %v823_v35  ;;  %v825_v43 = vmax.f32 %v759_v30, %v809_v36 }
 0x1d3   : > { %v824_v41 = vmax.f32 %v754_v34, %v808_v37  ;;  %v764_v42 = vadd.f32 %v4654_v54, %v763_v40 }
 0x1d4   : > { %v811_v44 = vmul.f32 0.2, %v769_v39 }
 0x1d5   : > { %v810_v45 = vmul.f32 0.2, %v764_v42  ;;  %v4003_v46 = vpop.f32.mrb[10].mxu1  ;;  %4027 = vmatprep.mubr.msk.f32.mxu0 %vm608_vm1, %v824_v41 }
 0x1d6   : > { %v779_v47 = vadd.f32 %v4003_v46, %v4654_v54  ;;  %v773_v48 = vpop.f32.mrb[11].mxu1  ;;  %4028 = vmatmul.mubr.msk.f32.gmra.mrb[22].mxu0 %vm608_vm1, %v825_v43  ;;  %v827_v50 = vmax.f32 %v769_v39, %v811_v44 }
 0x1d7   : > { %v826_v49 = vmax.f32 %v764_v42, %v810_v45  ;;  %v774_v31 = vadd.f32 %v4654_v54, %v773_v48 }
 0x1d8   : > { %v813_v51 = vmul.f32 0.2, %v779_v47 }
 0x1d9   : > { %v812_v52 = vmul.f32 0.2, %v774_v31  ;;  %v4006_v53 = vpop.f32.mrb[12].mxu1  ;;  %4030 = vmatprep.mubr.msk.f32.mxu0 %vm608_vm1, %v826_v49 }
 0x1da   : > { %v789_v55 = vadd.f32 %v4006_v53, %v4654_v54  ;;  %v783_v56 = vpop.f32.mrb[13].mxu1  ;;  %4031 = vmatmul.mubr.msk.f32.gmra.mrb[24].mxu0 %vm608_vm1, %v827_v50  ;;  %v829_v59 = vmax.f32 %v779_v47, %v813_v51 }
 0x1db   : > { %v828_v57 = vmax.f32 %v774_v31, %v812_v52  ;;  %v784_v58 = vadd.f32 %v4654_v54, %v783_v56 }
 0x1dc   : > { %v815_v60 = vmul.f32 0.2, %v789_v55 }
 0x1dd   : > { %v814_v61 = vmul.f32 0.2, %v784_v58  ;;  %v4009_v62 = vpop.f32.mrb[14].mxu1  ;;  %4033 = vmatprep.mubr.msk.f32.mxu0 %vm608_vm1, %v828_v57 }
 0x1de   : > { %v799_v63 = vadd.f32 %v4009_v62, %v4654_v54  ;;  %v793_v0 = vpop.f32.mrb[15].mxu1  ;;  %4034 = vmatmul.mubr.msk.f32.gmra.mrb[26].mxu0 %vm608_vm1, %v829_v59  ;;  %v831_v19 = vmax.f32 %v789_v55, %v815_v60 }
 0x1df   : > { %v830_v1 = vmax.f32 %v784_v58, %v814_v61  ;;  %v794_v2 = vadd.f32 %v4654_v54, %v793_v0  ;;  %v3535_v54 = vld [vmem:[%s5373_s1 + $0x18] sm:$0xff] }
 0x1e0   : > { %v817_v20 = vmul.f32 0.2, %v799_v63  ;;  %v4350_v25 = vpack.c.bf16 %v3535_v54, %v3534_v24 }
 0x1e1   : > { %v816_v21 = vmul.f32 0.2, %v794_v2  ;;  %4036 = vmatprep.mubr.msk.f32.mxu0 %vm608_vm1, %v830_v1 }
 0x1e2   : > { %4037 = vmatmul.mubr.msk.f32.gmra.mrb[28].mxu0 %vm608_vm1, %v831_v19  ;;  %v833_v23 = vmax.f32 %v799_v63, %v817_v20  ;;  %4351 = vmatprep.subr.bf16.mxu0 %v4350_v25 }
 0x1e3   : > { %v832_v22 = vmax.f32 %v794_v2, %v816_v21  ;;  %4353 = vmatpush3.bf16.msra.mxu0 %v4350_v25 }
 0x1e5   : > { %4039 = vmatprep.mubr.msk.f32.mxu0 %vm608_vm1, %v832_v22 }
 0x1e6   : > { %4040 = vmatmul.mubr.msk.f32.gmra.mrb[30].mxu0 %vm608_vm1, %v833_v23 }
 0x29d   : > { %v4020_v27 = vpop.f32.mrb[16].mxu0 }
 0x29e   : > { %v964_v28 = vadd.f32 %v4020_v27, %v4697_v26  ;;  %v958_v29 = vpop.f32.mrb[17].mxu0 }
 0x29f   : > { %v959_v30 = vadd.f32 %v4697_v26, %v958_v29 }
 0x2a0   : > { %v1038_v32 = vmul.f32 0.2, %v964_v28 }
 0x2a1   : > { %v1037_v33 = vmul.f32 0.2, %v959_v30  ;;  %v4023_v34 = vpop.f32.mrb[18].mxu0 }
 0x2a2   : > { %v974_v35 = vadd.f32 %v4023_v34, %v4697_v26  ;;  %v968_v36 = vpop.f32.mrb[19].mxu0  ;;  %v1054_v39 = vmax.f32 %v964_v28, %v1038_v32 }
 0x2a3   : > { %v1053_v37 = vmax.f32 %v959_v30, %v1037_v33  ;;  %v969_v38 = vadd.f32 %v4697_v26, %v968_v36 }
 0x2a4   : > { %v1040_v40 = vmul.f32 0.2, %v974_v35 }
 0x2a5   : > { %v1039_v41 = vmul.f32 0.2, %v969_v38  ;;  %v4026_v42 = vpop.f32.mrb[20].mxu0  ;;  %4050 = vmatprep.mubr.msk.f32.mxu1 %vm608_vm1, %v1053_v37 }
 0x2a6   : > { %v984_v43 = vadd.f32 %v4026_v42, %v4697_v26  ;;  %v978_v44 = vpop.f32.mrb[21].mxu0  ;;  %4051 = vmatmul.mubr.msk.f32.vlgmr.msra.gmra.mrb[16].mxu1 %vm608_vm1, %v1054_v39  ;;  %v1056_v47 = vmax.f32 %v974_v35, %v1040_v40 }
 0x2a7   : > { %v1055_v45 = vmax.f32 %v969_v38, %v1039_v41  ;;  %v979_v46 = vadd.f32 %v4697_v26, %v978_v44 }
 0x2a8   : > { %v1042_v48 = vmul.f32 0.2, %v984_v43 }
 0x2a9   : > { %v1041_v49 = vmul.f32 0.2, %v979_v46  ;;  %v4029_v31 = vpop.f32.mrb[22].mxu0  ;;  %4053 = vmatprep.mubr.msk.f32.mxu1 %vm608_vm1, %v1055_v45  ;;  %v3553_v45 = vld [vmem:[%s5375_s3 + $0x40] sm:$0xff] }
 0x2aa   : > { %v994_v50 = vadd.f32 %v4029_v31, %v4697_v26  ;;  %v988_v51 = vpop.f32.mrb[23].mxu0  ;;  %4054 = vmatmul.mubr.msk.f32.gmra.mrb[18].mxu1 %vm608_vm1, %v1056_v47  ;;  %v1058_v55 = vmax.f32 %v984_v43, %v1042_v48  ;;  %v3556_v48 = vld [vmem:[%s5375_s3 + $0x58] sm:$0xff] }
 0x2ab   : > { %v1057_v52 = vmax.f32 %v979_v46, %v1041_v49  ;;  %v989_v53 = vadd.f32 %v4697_v26, %v988_v51  ;;  %v3555_v46 = vld [vmem:[%s5375_s3 + $0x50] sm:$0xff]  ;;  %v3533_v51 = vld [vmem:[%s5378_s6] ss:$0 sm:$0xff] }
 0x2ac   : > { %v1044_v56 = vmul.f32 0.2, %v994_v50  ;;  %v4358_v49 = vpack.c.bf16 %v3556_v48, %v3555_v46 }
 0x2ad   : > { %v1043_v57 = vmul.f32 0.2, %v989_v53  ;;  %v4032_v58 = vpop.f32.mrb[24].mxu0  ;;  %4056 = vmatprep.mubr.msk.f32.mxu1 %vm608_vm1, %v1057_v52 }
 0x2ae   : > { %v1004_v59 = vadd.f32 %v4032_v58, %v4697_v26  ;;  %v998_v60 = vpop.f32.mrb[25].mxu0  ;;  %4057 = vmatmul.mubr.msk.f32.gmra.mrb[20].mxu1 %vm608_vm1, %v1058_v55  ;;  %v1060_v63 = vmax.f32 %v994_v50, %v1044_v56 }
 0x2af   : > { %v1059_v61 = vmax.f32 %v989_v53, %v1043_v57  ;;  %v999_v62 = vadd.f32 %v4697_v26, %v998_v60 }
 0x2b0   : > { %v1046_v0 = vmul.f32 0.2, %v1004_v59 }
 0x2b1   : > { %v1045_v1 = vmul.f32 0.2, %v999_v62  ;;  %v4035_v2 = vpop.f32.mrb[26].mxu0  ;;  %4059 = vmatprep.mubr.msk.f32.mxu1 %vm608_vm1, %v1059_v61 }
 0x2b2   : > { %v1014_v19 = vadd.f32 %v4035_v2, %v4697_v26  ;;  %v1008_v20 = vpop.f32.mrb[27].mxu0  ;;  %4060 = vmatmul.mubr.msk.f32.gmra.mrb[22].mxu1 %vm608_vm1, %v1060_v63  ;;  %v1062_v23 = vmax.f32 %v1004_v59, %v1046_v0 }
 0x2b3   : > { %v1061_v21 = vmax.f32 %v999_v62, %v1045_v1  ;;  %v1009_v22 = vadd.f32 %v4697_v26, %v1008_v20 }
 0x2b4   : > { %v1048_v24 = vmul.f32 0.2, %v1014_v19 }
 0x2b5   : > { %v1047_v54 = vmul.f32 0.2, %v1009_v22  ;;  %v4038_v25 = vpop.f32.mrb[28].mxu0  ;;  %4062 = vmatprep.mubr.msk.f32.mxu1 %vm608_vm1, %v1061_v21 }
 0x2b6   : > { %v1024_v27 = vadd.f32 %v4038_v25, %v4697_v26  ;;  %v1018_v28 = vpop.f32.mrb[29].mxu0  ;;  %4063 = vmatmul.mubr.msk.f32.gmra.mrb[24].mxu1 %vm608_vm1, %v1062_v23  ;;  %v1064_v32 = vmax.f32 %v1014_v19, %v1048_v24 }
 0x2b7   : > { %v1063_v29 = vmax.f32 %v1009_v22, %v1047_v54  ;;  %v1019_v30 = vadd.f32 %v4697_v26, %v1018_v28 }
 0x2b8   : > { %v1050_v33 = vmul.f32 0.2, %v1024_v27 }
 0x2b9   : > { %v1049_v34 = vmul.f32 0.2, %v1019_v30  ;;  %v4041_v35 = vpop.f32.mrb[30].mxu0  ;;  %4065 = vmatprep.mubr.msk.f32.mxu1 %vm608_vm1, %v1063_v29 }
 0x2ba   : > { %v1034_v36 = vadd.f32 %v4041_v35, %v4697_v26  ;;  %v1028_v37 = vpop.f32.mrb[31].mxu0  ;;  %4066 = vmatmul.mubr.msk.f32.gmra.mrb[26].mxu1 %vm608_vm1, %v1064_v32  ;;  %v1066_v40 = vmax.f32 %v1024_v27, %v1050_v33 }
 0x2bb   : > { %v1065_v38 = vmax.f32 %v1019_v30, %v1049_v34  ;;  %v1029_v39 = vadd.f32 %v4697_v26, %v1028_v37  ;;  %v3554_v26 = vld [vmem:[%s5375_s3 + $0x48] sm:$0xff] }
 0x2bc   : > { %v1052_v41 = vmul.f32 0.2, %v1034_v36  ;;  %v4354_v47 = vpack.c.bf16 %v3554_v26, %v3553_v45 }
 0x2bd   : > { %v1051_v42 = vmul.f32 0.2, %v1029_v39  ;;  %4068 = vmatprep.mubr.msk.f32.mxu1 %vm608_vm1, %v1065_v38  ;;  %v3576_v38 = vld [vmem:[%s5375_s3 + $0x70] sm:$0xff] }
 0x2be   : > { %4069 = vmatmul.mubr.msk.f32.gmra.mrb[28].mxu1 %vm608_vm1, %v1066_v40  ;;  %v1068_v44 = vmax.f32 %v1034_v36, %v1052_v41  ;;  %4355 = vmatprep.subr.bf16.mxu1 %v4354_v47  ;;  %v3577_v40 = vld [vmem:[%s5375_s3 + $0x78] sm:$0xff] }
 0x2bf   : > { %v1067_v43 = vmax.f32 %v1029_v39, %v1051_v42  ;;  %4357 = vmatpush3.bf16.msra.mxu1 %v4354_v47  ;;  %v4366_v41 = vpack.c.bf16 %v3577_v40, %v3576_v38  ;;  %v4841_v42 = vld [vmem:[%s5374_s2 + $0x1] ss:$0 sm:$0xff] }
 0x2c0   : > { %4359 = vmatprep.subr.bf16.mxu1 %v4358_v49 }
 0x2c1   : > { %4071 = vmatprep.mubr.msk.f32.mxu1 %vm608_vm1, %v1067_v43 }
 0x2c2   : > { %4072 = vmatmul.mubr.msk.f32.gmra.mrb[30].mxu1 %vm608_vm1, %v1068_v44 }
 0x2c3   : > { %4361 = vmatpush3.bf16.msra.mxu1 %v4358_v49 }
 0x379   : > { %v4052_v31 = vpop.f32.mrb[16].mxu1 }
 0x37a   : > { %v1267_v50 = vadd.f32 %v4052_v31, %v4502_v4  ;;  %v1187_v52 = vpop.f32.mrb[17].mxu1 }
 0x37b   : > { %v1266_v53 = vadd.f32 %v1187_v52, %v4499_v3 }
 0x37c   : > { %v4750_v57 = vadd.f32 %v3533_v51, %v1267_v50 }
 0x37d   : > { %v4748_v55 = vadd.f32 %v3533_v51, %v1266_v53  ;;  %v4055_v56 = vpop.f32.mrb[18].mxu1 }
 0x37e   : > { %v1269_v58 = vadd.f32 %v4055_v56, %v4514_v6  ;;  %v1197_v59 = vpop.f32.mrb[19].mxu1 }
 0x37f   : > { %v1268_v60 = vadd.f32 %v1197_v59, %v4505_v5  ;;  %4078 = vmatprep.mubr.msk.f32.mxu0 %vm373_vm0, %v4748_v55 }
 0x380   : > { %4079 = vmatmul.mubr.msk.f32.vlgmr.msra.gmra.mrb[32].mxu0 %vm373_vm0, %v4750_v57  ;;  %v4760_v3 = vadd.f32 %v3533_v51, %v1269_v58 }
 0x381   : > { %v4758_v4 = vadd.f32 %v3533_v51, %v1268_v60  ;;  %v4058_v61 = vpop.f32.mrb[20].mxu1 }
 0x382   : > { %v1271_v62 = vadd.f32 %v4058_v61, %v4524_v8  ;;  %v1207_v63 = vpop.f32.mrb[21].mxu1 }
 0x383   : > { %v1270_v0 = vadd.f32 %v1207_v63, %v4517_v7  ;;  %4081 = vmatprep.mubr.msk.f32.mxu0 %vm373_vm0, %v4758_v4 }
 0x384   : > { %4082 = vmatmul.mubr.msk.f32.gmra.mrb[34].mxu0 %vm373_vm0, %v4760_v3  ;;  %v4770_v1 = vadd.f32 %v3533_v51, %v1271_v62 }
 0x385   : > { %v4768_v5 = vadd.f32 %v3533_v51, %v1270_v0  ;;  %v4061_v6 = vpop.f32.mrb[22].mxu1 }
 0x386   : > { %v1273_v2 = vadd.f32 %v4061_v6, %v4534_v10  ;;  %v1217_v19 = vpop.f32.mrb[23].mxu1 }
 0x387   : > { %v1272_v20 = vadd.f32 %v1217_v19, %v4527_v9  ;;  %4084 = vmatprep.mubr.msk.f32.mxu0 %vm373_vm0, %v4768_v5 }
 0x388   : > { %4085 = vmatmul.mubr.msk.f32.gmra.mrb[36].mxu0 %vm373_vm0, %v4770_v1  ;;  %v4780_v21 = vadd.f32 %v3533_v51, %v1273_v2 }
 0x389   : > { %v4778_v7 = vadd.f32 %v3533_v51, %v1272_v20  ;;  %v4064_v8 = vpop.f32.mrb[24].mxu1 }
 0x38a   : > { %v1275_v22 = vadd.f32 %v4064_v8, %v4544_v12  ;;  %v1227_v23 = vpop.f32.mrb[25].mxu1 }
 0x38b   : > { %v1274_v24 = vadd.f32 %v1227_v23, %v4537_v11  ;;  %4087 = vmatprep.mubr.msk.f32.mxu0 %vm373_vm0, %v4778_v7 }
 0x38c   : > { %4088 = vmatmul.mubr.msk.f32.gmra.mrb[38].mxu0 %vm373_vm0, %v4780_v21  ;;  %v4790_v54 = vadd.f32 %v3533_v51, %v1275_v22 }
 0x38d   : > { %v4788_v9 = vadd.f32 %v3533_v51, %v1274_v24  ;;  %v4067_v10 = vpop.f32.mrb[26].mxu1 }
 0x38e   : > { %v1277_v25 = vadd.f32 %v4067_v10, %v4554_v14  ;;  %v1237_v27 = vpop.f32.mrb[27].mxu1 }
 0x38f   : > { %v1276_v28 = vadd.f32 %v1237_v27, %v4547_v13  ;;  %4090 = vmatprep.mubr.msk.f32.mxu0 %vm373_vm0, %v4788_v9 }
 0x390   : > { %4091 = vmatmul.mubr.msk.f32.gmra.mrb[40].mxu0 %vm373_vm0, %v4790_v54  ;;  %v4800_v29 = vadd.f32 %v3533_v51, %v1277_v25 }
 0x391   : > { %v4798_v11 = vadd.f32 %v3533_v51, %v1276_v28  ;;  %v4070_v12 = vpop.f32.mrb[28].mxu1 }
 0x392   : > { %v1279_v30 = vadd.f32 %v4070_v12, %v4564_v16  ;;  %v1247_v32 = vpop.f32.mrb[29].mxu1 }
 0x393   : > { %v1278_v33 = vadd.f32 %v1247_v32, %v4557_v15  ;;  %4093 = vmatprep.mubr.msk.f32.mxu0 %vm373_vm0, %v4798_v11 }
 0x394   : > { %4094 = vmatmul.mubr.msk.f32.gmra.mrb[42].mxu0 %vm373_vm0, %v4800_v29  ;;  %v4810_v34 = vadd.f32 %v3533_v51, %v1279_v30 }
 0x395   : > { %v4808_v13 = vadd.f32 %v3533_v51, %v1278_v33  ;;  %v4073_v14 = vpop.f32.mrb[30].mxu1 }
 0x396   : > { %v1281_v35 = vadd.f32 %v4073_v14, %v4574_v18  ;;  %v1257_v36 = vpop.f32.mrb[31].mxu1  ;;  %v3575_v18 = vld [vmem:[%s5375_s3 + $0x68] sm:$0xff] }
 0x397   : > { %v1280_v37 = vadd.f32 %v1257_v36, %v4567_v17  ;;  %4096 = vmatprep.mubr.msk.f32.mxu0 %vm373_vm0, %v4808_v13  ;;  %v3574_v17 = vld [vmem:[%s5375_s3 + $0x60] sm:$0xff] }
 0x398   : > { %4097 = vmatmul.mubr.msk.f32.gmra.mrb[44].mxu0 %vm373_vm0, %v4810_v34  ;;  %v4820_v16 = vadd.f32 %v3533_v51, %v1281_v35  ;;  %v4362_v39 = vpack.c.bf16 %v3575_v18, %v3574_v17 }
 0x399   : > { %v4818_v15 = vadd.f32 %v3533_v51, %v1280_v37 }
 0x39a   : > { %4363 = vmatprep.subr.bf16.mxu0 %v4362_v39 }
 0x39b   : > { %4099 = vmatprep.mubr.msk.f32.mxu0 %vm373_vm0, %v4818_v15  ;;  %4365 = vmatpush3.bf16.msra.mxu0 %v4362_v39 }
 0x39c   : > { %4100 = vmatmul.mubr.msk.f32.gmra.mrb[46].mxu0 %vm373_vm0, %v4820_v16  ;;  %4367 = vmatprep.subr.bf16.mxu0 %v4366_v41 }
 0x39f   : > { %4369 = vmatpush3.bf16.msra.mxu0 %v4366_v41 }
 0x453   : > { %v4080_v43 = vpop.f32.mrb[32].mxu0 }
 0x454   : > { %v1431_v44 = vadd.f32 %v4080_v43, %v4841_v42  ;;  %v1425_v45 = vpop.f32.mrb[33].mxu0 }
 0x455   : > { %v1426_v26 = vadd.f32 %v4841_v42, %v1425_v45 }
 0x456   : > { %v1505_v46 = vmul.f32 0.2, %v1431_v44 }
 0x457   : > { %v1504_v47 = vmul.f32 0.2, %v1426_v26  ;;  %v4083_v48 = vpop.f32.mrb[34].mxu0 }
 0x458   : > { %v1441_v49 = vadd.f32 %v4083_v48, %v4841_v42  ;;  %v1435_v31 = vpop.f32.mrb[35].mxu0  ;;  %v1521_v52 = vmax.f32 %v1431_v44, %v1505_v46 }
 0x459   : > { %v1520_v50 = vmax.f32 %v1426_v26, %v1504_v47  ;;  %v1436_v51 = vadd.f32 %v4841_v42, %v1435_v31 }
 0x45a   : > { %v1507_v53 = vmul.f32 0.2, %v1441_v49 }
 0x45b   : > { %v1506_v56 = vmul.f32 0.2, %v1436_v51  ;;  %v4086_v58 = vpop.f32.mrb[36].mxu0  ;;  %4110 = vmatprep.mubr.msk.f32.mxu1 %vm608_vm1, %v1520_v50 }
 0x45c   : > { %v1451_v59 = vadd.f32 %v4086_v58, %v4841_v42  ;;  %v1445_v60 = vpop.f32.mrb[37].mxu0  ;;  %4111 = vmatmul.mubr.msk.f32.vlgmr.msra.gmra.mrb[32].mxu1 %vm608_vm1, %v1521_v52  ;;  %v1523_v63 = vmax.f32 %v1441_v49, %v1507_v53 }
 0x45d   : > { %v1522_v61 = vmax.f32 %v1436_v51, %v1506_v56  ;;  %v1446_v62 = vadd.f32 %v4841_v42, %v1445_v60 }
 0x45e   : > { %v1509_v0 = vmul.f32 0.2, %v1451_v59 }
 0x45f   : > { %v1508_v6 = vmul.f32 0.2, %v1446_v62  ;;  %v4089_v2 = vpop.f32.mrb[38].mxu0  ;;  %4113 = vmatprep.mubr.msk.f32.mxu1 %vm608_vm1, %v1522_v61  ;;  %v3595_v61 = vld [vmem:[%s5377_s5 + $0x20] sm:$0xff] }
 0x460   : > { %v1461_v19 = vadd.f32 %v4089_v2, %v4841_v42  ;;  %v1455_v20 = vpop.f32.mrb[39].mxu0  ;;  %4114 = vmatmul.mubr.msk.f32.gmra.mrb[34].mxu1 %vm608_vm1, %v1523_v63  ;;  %v1525_v23 = vmax.f32 %v1451_v59, %v1509_v0  ;;  %v3598_v0 = vld [vmem:[%s5377_s5 + $0x38] sm:$0xff]  ;;  %v4890_v2 = vld [vmem:[%s5376_s4 + $0x2] ss:$0 sm:$0xff] }
 0x461   : > { %v1524_v8 = vmax.f32 %v1446_v62, %v1508_v6  ;;  %v1456_v22 = vadd.f32 %v4841_v42, %v1455_v20  ;;  %v3597_v62 = vld [vmem:[%s5377_s5 + $0x30] sm:$0xff] }
 0x462   : > { %v1511_v24 = vmul.f32 0.2, %v1461_v19  ;;  %v4374_v6 = vpack.c.bf16 %v3598_v0, %v3597_v62 }
 0x463   : > { %v1510_v10 = vmul.f32 0.2, %v1456_v22  ;;  %v4092_v25 = vpop.f32.mrb[40].mxu0  ;;  %4116 = vmatprep.mubr.msk.f32.mxu1 %vm608_vm1, %v1524_v8 }
 0x464   : > { %v1471_v27 = vadd.f32 %v4092_v25, %v4841_v42  ;;  %v1465_v28 = vpop.f32.mrb[41].mxu0  ;;  %4117 = vmatmul.mubr.msk.f32.gmra.mrb[36].mxu1 %vm608_vm1, %v1525_v23  ;;  %v1527_v32 = vmax.f32 %v1461_v19, %v1511_v24 }
 0x465   : > { %v1526_v12 = vmax.f32 %v1456_v22, %v1510_v10  ;;  %v1466_v30 = vadd.f32 %v4841_v42, %v1465_v28 }
 0x466   : > { %v1513_v33 = vmul.f32 0.2, %v1471_v27 }
 0x467   : > { %v1512_v14 = vmul.f32 0.2, %v1466_v30  ;;  %v4095_v35 = vpop.f32.mrb[42].mxu0  ;;  %4119 = vmatprep.mubr.msk.f32.mxu1 %vm608_vm1, %v1526_v12 }
 0x468   : > { %v1481_v36 = vadd.f32 %v4095_v35, %v4841_v42  ;;  %v1475_v37 = vpop.f32.mrb[43].mxu0  ;;  %4120 = vmatmul.mubr.msk.f32.gmra.mrb[38].mxu1 %vm608_vm1, %v1527_v32  ;;  %v1529_v38 = vmax.f32 %v1471_v27, %v1513_v33 }
 0x469   : > { %v1528_v17 = vmax.f32 %v1466_v30, %v1512_v14  ;;  %v1476_v18 = vadd.f32 %v4841_v42, %v1475_v37 }
 0x46a   : > { %v1515_v39 = vmul.f32 0.2, %v1481_v36 }
 0x46b   : > { %v1514_v40 = vmul.f32 0.2, %v1476_v18  ;;  %v4098_v41 = vpop.f32.mrb[44].mxu0  ;;  %4122 = vmatprep.mubr.msk.f32.mxu1 %vm608_vm1, %v1528_v17 }
 0x46c   : > { %v1491_v43 = vadd.f32 %v4098_v41, %v4841_v42  ;;  %v1485_v44 = vpop.f32.mrb[45].mxu0  ;;  %4123 = vmatmul.mubr.msk.f32.gmra.mrb[40].mxu1 %vm608_vm1, %v1529_v38  ;;  %v1531_v46 = vmax.f32 %v1481_v36, %v1515_v39 }
 0x46d   : > { %v1530_v45 = vmax.f32 %v1476_v18, %v1514_v40  ;;  %v1486_v26 = vadd.f32 %v4841_v42, %v1485_v44 }
 0x46e   : > { %v1517_v47 = vmul.f32 0.2, %v1491_v43 }
 0x46f   : > { %v1516_v48 = vmul.f32 0.2, %v1486_v26  ;;  %v4101_v49 = vpop.f32.mrb[46].mxu0  ;;  %4125 = vmatprep.mubr.msk.f32.mxu1 %vm608_vm1, %v1530_v45 }
 0x470   : > { %v1501_v31 = vadd.f32 %v4101_v49, %v4841_v42  ;;  %v1495_v50 = vpop.f32.mrb[47].mxu0  ;;  %4126 = vmatmul.mubr.msk.f32.gmra.mrb[42].mxu1 %vm608_vm1, %v1531_v46  ;;  %v1533_v53 = vmax.f32 %v1491_v43, %v1517_v47 }
 0x471   : > { %v1532_v51 = vmax.f32 %v1486_v26, %v1516_v48  ;;  %v1496_v52 = vadd.f32 %v4841_v42, %v1495_v50  ;;  %v3596_v42 = vld [vmem:[%s5377_s5 + $0x28] sm:$0xff] }
 0x472   : > { %v1519_v56 = vmul.f32 0.2, %v1501_v31  ;;  %v4370_v63 = vpack.c.bf16 %v3596_v42, %v3595_v61 }
 0x473   : > { %v1518_v58 = vmul.f32 0.2, %v1496_v52  ;;  %4128 = vmatprep.mubr.msk.f32.mxu1 %vm608_vm1, %v1532_v51 }
 0x474   : > { %4129 = vmatmul.mubr.msk.f32.gmra.mrb[44].mxu1 %vm608_vm1, %v1533_v53  ;;  %v1535_v60 = vmax.f32 %v1501_v31, %v1519_v56  ;;  %4371 = vmatprep.subr.bf16.mxu1 %v4370_v63 }
 0x475   : > { %v1534_v59 = vmax.f32 %v1496_v52, %v1518_v58  ;;  %4373 = vmatpush3.bf16.msra.mxu1 %v4370_v63 }
 0x476   : > { %4375 = vmatprep.subr.bf16.mxu1 %v4374_v6 }
 0x477   : > { %4131 = vmatprep.mubr.msk.f32.mxu1 %vm608_vm1, %v1534_v59 }
 0x478   : > { %4132 = vmatmul.mubr.msk.f32.gmra.mrb[46].mxu1 %vm608_vm1, %v1535_v60 }
 0x479   : > { %4377 = vmatpush3.bf16.msra.mxu1 %v4374_v6 }
 0x52f   : > { %v4112_v19 = vpop.f32.mrb[32].mxu1 }
 0x530   : > { %v1666_v20 = vadd.f32 %v4112_v19, %v4890_v2  ;;  %v1660_v8 = vpop.f32.mrb[33].mxu1 }
 0x531   : > { %v1661_v22 = vadd.f32 %v4890_v2, %v1660_v8 }
 0x532   : > { %v1740_v23 = vmul.f32 0.2, %v1666_v20 }
 0x533   : > { %v1739_v24 = vmul.f32 0.2, %v1661_v22  ;;  %v4115_v10 = vpop.f32.mrb[34].mxu1 }
 0x534   : > { %v1676_v25 = vadd.f32 %v4115_v10, %v4890_v2  ;;  %v1670_v27 = vpop.f32.mrb[35].mxu1  ;;  %v1756_v30 = vmax.f32 %v1666_v20, %v1740_v23 }
 0x535   : > { %v1755_v28 = vmax.f32 %v1661_v22, %v1739_v24  ;;  %v1671_v12 = vadd.f32 %v4890_v2, %v1670_v27 }
 0x536   : > { %v1742_v32 = vmul.f32 0.2, %v1676_v25 }
 0x537   : > { %v1741_v33 = vmul.f32 0.2, %v1671_v12  ;;  %v4118_v14 = vpop.f32.mrb[36].mxu1  ;;  %4142 = vmatprep.mubr.msk.f32.mxu0 %vm608_vm1, %v1755_v28 }
 0x538   : > { %v1686_v35 = vadd.f32 %v4118_v14, %v4890_v2  ;;  %v1680_v36 = vpop.f32.mrb[37].mxu1  ;;  %4143 = vmatmul.mubr.msk.f32.vlgmr.msra.gmra.mrb[48].mxu0 %vm608_vm1, %v1756_v30  ;;  %v1758_v18 = vmax.f32 %v1676_v25, %v1742_v32 }
 0x539   : > { %v1757_v37 = vmax.f32 %v1671_v12, %v1741_v33  ;;  %v1681_v17 = vadd.f32 %v4890_v2, %v1680_v36 }
 0x53a   : > { %v1744_v38 = vmul.f32 0.2, %v1686_v35 }
 0x53b   : > { %v1743_v39 = vmul.f32 0.2, %v1681_v17  ;;  %v4121_v40 = vpop.f32.mrb[38].mxu1  ;;  %4145 = vmatprep.mubr.msk.f32.mxu0 %vm608_vm1, %v1757_v37  ;;  %v3616_v37 = vld [vmem:[%s5373_s1 + $0x20] sm:$0xff] }
 0x53c   : > { %v1696_v41 = vadd.f32 %v4121_v40, %v4890_v2  ;;  %v1690_v43 = vpop.f32.mrb[39].mxu1  ;;  %4146 = vmatmul.mubr.msk.f32.gmra.mrb[50].mxu0 %vm608_vm1, %v1758_v18  ;;  %v1760_v26 = vmax.f32 %v1686_v35, %v1744_v38  ;;  %v4933_v18 = vld [vmem:[%s5376_s4 + $0x3] ss:$0 sm:$0xff] }
 0x53d   : > { %v1759_v44 = vmax.f32 %v1681_v17, %v1743_v39  ;;  %v1691_v45 = vadd.f32 %v4890_v2, %v1690_v43 }
 0x53e   : > { %v1746_v46 = vmul.f32 0.2, %v1696_v41 }
 0x53f   : > { %v1745_v47 = vmul.f32 0.2, %v1691_v45  ;;  %v4124_v48 = vpop.f32.mrb[40].mxu1  ;;  %4148 = vmatprep.mubr.msk.f32.mxu0 %vm608_vm1, %v1759_v44 }
 0x540   : > { %v1706_v49 = vadd.f32 %v4124_v48, %v4890_v2  ;;  %v1700_v31 = vpop.f32.mrb[41].mxu1  ;;  %4149 = vmatmul.mubr.msk.f32.gmra.mrb[52].mxu0 %vm608_vm1, %v1760_v26  ;;  %v1762_v52 = vmax.f32 %v1696_v41, %v1746_v46 }
 0x541   : > { %v1761_v50 = vmax.f32 %v1691_v45, %v1745_v47  ;;  %v1701_v51 = vadd.f32 %v4890_v2, %v1700_v31 }
 0x542   : > { %v1748_v53 = vmul.f32 0.2, %v1706_v49 }
 0x543   : > { %v1747_v56 = vmul.f32 0.2, %v1701_v51  ;;  %v4127_v58 = vpop.f32.mrb[42].mxu1  ;;  %4151 = vmatprep.mubr.msk.f32.mxu0 %vm608_vm1, %v1761_v50 }
 0x544   : > { %v1716_v59 = vadd.f32 %v4127_v58, %v4890_v2  ;;  %v1710_v60 = vpop.f32.mrb[43].mxu1  ;;  %4152 = vmatmul.mubr.msk.f32.gmra.mrb[54].mxu0 %vm608_vm1, %v1762_v52  ;;  %v1764_v62 = vmax.f32 %v1706_v49, %v1748_v53 }
 0x545   : > { %v1763_v61 = vmax.f32 %v1701_v51, %v1747_v56  ;;  %v1711_v42 = vadd.f32 %v4890_v2, %v1710_v60 }
 0x546   : > { %v1750_v63 = vmul.f32 0.2, %v1716_v59 }
 0x547   : > { %v1749_v0 = vmul.f32 0.2, %v1711_v42  ;;  %v4130_v6 = vpop.f32.mrb[44].mxu1  ;;  %4154 = vmatprep.mubr.msk.f32.mxu0 %vm608_vm1, %v1763_v61 }
 0x548   : > { %v1726_v19 = vadd.f32 %v4130_v6, %v4890_v2  ;;  %v1720_v20 = vpop.f32.mrb[45].mxu1  ;;  %4155 = vmatmul.mubr.msk.f32.gmra.mrb[56].mxu0 %vm608_vm1, %v1764_v62  ;;  %v1766_v23 = vmax.f32 %v1716_v59, %v1750_v63 }
 0x549   : > { %v1765_v8 = vmax.f32 %v1711_v42, %v1749_v0  ;;  %v1721_v22 = vadd.f32 %v4890_v2, %v1720_v20 }
 0x54a   : > { %v1752_v24 = vmul.f32 0.2, %v1726_v19 }
 0x54b   : > { %v1751_v10 = vmul.f32 0.2, %v1721_v22  ;;  %v4133_v25 = vpop.f32.mrb[46].mxu1  ;;  %4157 = vmatprep.mubr.msk.f32.mxu0 %vm608_vm1, %v1765_v8 }
 0x54c   : > { %v1736_v27 = vadd.f32 %v4133_v25, %v4890_v2  ;;  %v1730_v28 = vpop.f32.mrb[47].mxu1  ;;  %4158 = vmatmul.mubr.msk.f32.gmra.mrb[58].mxu0 %vm608_vm1, %v1766_v23  ;;  %v1768_v32 = vmax.f32 %v1726_v19, %v1752_v24 }
 0x54d   : > { %v1767_v12 = vmax.f32 %v1721_v22, %v1751_v10  ;;  %v1731_v30 = vadd.f32 %v4890_v2, %v1730_v28  ;;  %v3617_v2 = vld [vmem:[%s5373_s1 + $0x28] sm:$0xff] }
 0x54e   : > { %v1754_v33 = vmul.f32 0.2, %v1736_v27  ;;  %v4378_v17 = vpack.c.bf16 %v3617_v2, %v3616_v37 }
 0x54f   : > { %v1753_v14 = vmul.f32 0.2, %v1731_v30  ;;  %4160 = vmatprep.mubr.msk.f32.mxu0 %vm608_vm1, %v1767_v12 }
 0x550   : > { %4161 = vmatmul.mubr.msk.f32.gmra.mrb[60].mxu0 %vm608_vm1, %v1768_v32  ;;  %v1770_v36 = vmax.f32 %v1736_v27, %v1754_v33  ;;  %4379 = vmatprep.subr.bf16.mxu0 %v4378_v17 }
 0x551   : > { %v1769_v35 = vmax.f32 %v1731_v30, %v1753_v14  ;;  %4381 = vmatpush3.bf16.msra.mxu0 %v4378_v17 }
 0x553   : > { %4163 = vmatprep.mubr.msk.f32.mxu0 %vm608_vm1, %v1769_v35 }
 0x554   : > { %4164 = vmatmul.mubr.msk.f32.gmra.mrb[62].mxu0 %vm608_vm1, %v1770_v36 }
 0x60b   : > { %v4144_v38 = vpop.f32.mrb[48].mxu0 }
 0x60c   : > { %v1901_v39 = vadd.f32 %v4144_v38, %v4933_v18  ;;  %v1895_v40 = vpop.f32.mrb[49].mxu0 }
 0x60d   : > { %v1896_v41 = vadd.f32 %v4933_v18, %v1895_v40 }
 0x60e   : > { %v1975_v43 = vmul.f32 0.2, %v1901_v39 }
 0x60f   : > { %v1974_v44 = vmul.f32 0.2, %v1896_v41  ;;  %v4147_v45 = vpop.f32.mrb[50].mxu0 }
 0x610   : > { %v1911_v26 = vadd.f32 %v4147_v45, %v4933_v18  ;;  %v1905_v46 = vpop.f32.mrb[51].mxu0  ;;  %v1991_v49 = vmax.f32 %v1901_v39, %v1975_v43 }
 0x611   : > { %v1990_v47 = vmax.f32 %v1896_v41, %v1974_v44  ;;  %v1906_v48 = vadd.f32 %v4933_v18, %v1905_v46 }
 0x612   : > { %v1977_v31 = vmul.f32 0.2, %v1911_v26 }
 0x613   : > { %v1976_v50 = vmul.f32 0.2, %v1906_v48  ;;  %v4150_v51 = vpop.f32.mrb[52].mxu0  ;;  %4174 = vmatprep.mubr.msk.f32.mxu1 %vm608_vm1, %v1990_v47 }
 0x614   : > { %v1921_v52 = vadd.f32 %v4150_v51, %v4933_v18  ;;  %v1915_v53 = vpop.f32.mrb[53].mxu0  ;;  %4175 = vmatmul.mubr.msk.f32.vlgmr.msra.gmra.mrb[48].mxu1 %vm608_vm1, %v1991_v49  ;;  %v1993_v59 = vmax.f32 %v1911_v26, %v1977_v31 }
 0x615   : > { %v1992_v56 = vmax.f32 %v1906_v48, %v1976_v50  ;;  %v1916_v58 = vadd.f32 %v4933_v18, %v1915_v53 }
 0x616   : > { %v1979_v60 = vmul.f32 0.2, %v1921_v52 }
 0x617   : > { %v1978_v61 = vmul.f32 0.2, %v1916_v58  ;;  %v4153_v42 = vpop.f32.mrb[54].mxu0  ;;  %4177 = vmatprep.mubr.msk.f32.mxu1 %vm608_vm1, %v1992_v56  ;;  %v3635_v56 = vld [vmem:[%s5375_s3 + $0x80] sm:$0xff] }
 0x618   : > { %v1931_v62 = vadd.f32 %v4153_v42, %v4933_v18  ;;  %v1925_v63 = vpop.f32.mrb[55].mxu0  ;;  %4178 = vmatmul.mubr.msk.f32.gmra.mrb[50].mxu1 %vm608_vm1, %v1993_v59  ;;  %v1995_v19 = vmax.f32 %v1921_v52, %v1979_v60  ;;  %v3638_v60 = vld [vmem:[%s5375_s3 + $0x98] sm:$0xff] }
 0x619   : > { %v1994_v0 = vmax.f32 %v1916_v58, %v1978_v61  ;;  %v1926_v6 = vadd.f32 %v4933_v18, %v1925_v63  ;;  %v3637_v58 = vld [vmem:[%s5375_s3 + $0x90] sm:$0xff]  ;;  %v3615_v63 = vld [vmem:[%s5378_s6 + $0x1] ss:$0 sm:$0xff] }
 0x61a   : > { %v1981_v20 = vmul.f32 0.2, %v1931_v62  ;;  %v4386_v61 = vpack.c.bf16 %v3638_v60, %v3637_v58 }
 0x61b   : > { %v1980_v8 = vmul.f32 0.2, %v1926_v6  ;;  %v4156_v22 = vpop.f32.mrb[56].mxu0  ;;  %4180 = vmatprep.mubr.msk.f32.mxu1 %vm608_vm1, %v1994_v0 }
 0x61c   : > { %v1941_v23 = vadd.f32 %v4156_v22, %v4933_v18  ;;  %v1935_v24 = vpop.f32.mrb[57].mxu0  ;;  %4181 = vmatmul.mubr.msk.f32.gmra.mrb[52].mxu1 %vm608_vm1, %v1995_v19  ;;  %v1997_v27 = vmax.f32 %v1931_v62, %v1981_v20 }
 0x61d   : > { %v1996_v10 = vmax.f32 %v1926_v6, %v1980_v8  ;;  %v1936_v25 = vadd.f32 %v4933_v18, %v1935_v24 }
 0x61e   : > { %v1983_v28 = vmul.f32 0.2, %v1941_v23 }
 0x61f   : > { %v1982_v12 = vmul.f32 0.2, %v1936_v25  ;;  %v4159_v30 = vpop.f32.mrb[58].mxu0  ;;  %4183 = vmatprep.mubr.msk.f32.mxu1 %vm608_vm1, %v1996_v10 }
 0x620   : > { %v1951_v32 = vadd.f32 %v4159_v30, %v4933_v18  ;;  %v1945_v33 = vpop.f32.mrb[59].mxu0  ;;  %4184 = vmatmul.mubr.msk.f32.gmra.mrb[54].mxu1 %vm608_vm1, %v1997_v27  ;;  %v1999_v36 = vmax.f32 %v1941_v23, %v1983_v28 }
 0x621   : > { %v1998_v14 = vmax.f32 %v1936_v25, %v1982_v12  ;;  %v1946_v35 = vadd.f32 %v4933_v18, %v1945_v33 }
 0x622   : > { %v1985_v37 = vmul.f32 0.2, %v1951_v32 }
 0x623   : > { %v1984_v2 = vmul.f32 0.2, %v1946_v35  ;;  %v4162_v17 = vpop.f32.mrb[60].mxu0  ;;  %4186 = vmatprep.mubr.msk.f32.mxu1 %vm608_vm1, %v1998_v14 }
 0x624   : > { %v1961_v38 = vadd.f32 %v4162_v17, %v4933_v18  ;;  %v1955_v39 = vpop.f32.mrb[61].mxu0  ;;  %4187 = vmatmul.mubr.msk.f32.gmra.mrb[56].mxu1 %vm608_vm1, %v1999_v36  ;;  %v2001_v43 = vmax.f32 %v1951_v32, %v1985_v37 }
 0x625   : > { %v2000_v40 = vmax.f32 %v1946_v35, %v1984_v2  ;;  %v1956_v41 = vadd.f32 %v4933_v18, %v1955_v39 }
 0x626   : > { %v1987_v44 = vmul.f32 0.2, %v1961_v38 }
 0x627   : > { %v1986_v45 = vmul.f32 0.2, %v1956_v41  ;;  %v4165_v26 = vpop.f32.mrb[62].mxu0  ;;  %4189 = vmatprep.mubr.msk.f32.mxu1 %vm608_vm1, %v2000_v40 }
 0x628   : > { %v1971_v46 = vadd.f32 %v4165_v26, %v4933_v18  ;;  %v1965_v47 = vpop.f32.mrb[63].mxu0  ;;  %4190 = vmatmul.mubr.msk.f32.gmra.mrb[58].mxu1 %vm608_vm1, %v2001_v43  ;;  %v2003_v31 = vmax.f32 %v1961_v38, %v1987_v44 }
 0x629   : > { %v2002_v48 = vmax.f32 %v1956_v41, %v1986_v45  ;;  %v1966_v49 = vadd.f32 %v4933_v18, %v1965_v47  ;;  %v3636_v18 = vld [vmem:[%s5375_s3 + $0x88] sm:$0xff] }
 0x62a   : > { %v1989_v50 = vmul.f32 0.2, %v1971_v46  ;;  %v4382_v59 = vpack.c.bf16 %v3636_v18, %v3635_v56 }
 0x62b   : > { %v1988_v51 = vmul.f32 0.2, %v1966_v49  ;;  %4192 = vmatprep.mubr.msk.f32.mxu1 %vm608_vm1, %v2002_v48  ;;  %v3658_v48 = vld [vmem:[%s5375_s3 + $0xb0] sm:$0xff] }
 0x62c   : > { %4193 = vmatmul.mubr.msk.f32.gmra.mrb[60].mxu1 %vm608_vm1, %v2003_v31  ;;  %v2005_v53 = vmax.f32 %v1971_v46, %v1989_v50  ;;  %4383 = vmatprep.subr.bf16.mxu1 %v4382_v59  ;;  %v3659_v31 = vld [vmem:[%s5375_s3 + $0xb8] sm:$0xff] }
 0x62d   : > { %v2004_v52 = vmax.f32 %v1966_v49, %v1988_v51  ;;  %4385 = vmatpush3.bf16.msra.mxu1 %v4382_v59  ;;  %v4394_v50 = vpack.c.bf16 %v3659_v31, %v3658_v48  ;;  %v5077_v51 = vld [vmem:[%s5374_s2 + $0x2] ss:$0 sm:$0xff] }
 0x62e   : > { %4387 = vmatprep.subr.bf16.mxu1 %v4386_v61 }
 0x62f   : > { %4195 = vmatprep.mubr.msk.f32.mxu1 %vm608_vm1, %v2004_v52 }
 0x630   : > { %4196 = vmatmul.mubr.msk.f32.gmra.mrb[62].mxu1 %vm608_vm1, %v2005_v53 }
 0x631   : > { %4389 = vmatpush3.bf16.msra.mxu1 %v4386_v61 }
 0x6e7   : > { %v4176_v42 = vpop.f32.mrb[48].mxu1 }
 0x6e8   : > { %v2205_v62 = vadd.f32 %v4176_v42, %v4750_v57  ;;  %v2125_v0 = vpop.f32.mrb[49].mxu1 }
 0x6e9   : > { %v2204_v6 = vadd.f32 %v2125_v0, %v4748_v55 }
 0x6ea   : > { %v4986_v8 = vadd.f32 %v3615_v63, %v2205_v62 }
 0x6eb   : > { %v4984_v19 = vadd.f32 %v3615_v63, %v2204_v6  ;;  %v4179_v20 = vpop.f32.mrb[50].mxu1 }
 0x6ec   : > { %v2207_v22 = vadd.f32 %v4179_v20, %v4760_v3  ;;  %v2135_v23 = vpop.f32.mrb[51].mxu1 }
 0x6ed   : > { %v2206_v24 = vadd.f32 %v2135_v23, %v4758_v4  ;;  %4202 = vmatprep.mubr.msk.f32.mxu0 %vm373_vm0, %v4984_v19 }
 0x6ee   : > { %4203 = vmatmul.mubr.msk.f32.vlgmr.msra.gmra.mrb[64].mxu0 %vm373_vm0, %v4986_v8  ;;  %v4996_v55 = vadd.f32 %v3615_v63, %v2207_v22 }
 0x6ef   : > { %v4994_v57 = vadd.f32 %v3615_v63, %v2206_v24  ;;  %v4182_v10 = vpop.f32.mrb[52].mxu1 }
 0x6f0   : > { %v2209_v25 = vadd.f32 %v4182_v10, %v4770_v1  ;;  %v2145_v27 = vpop.f32.mrb[53].mxu1 }
 0x6f1   : > { %v2208_v28 = vadd.f32 %v2145_v27, %v4768_v5  ;;  %4205 = vmatprep.mubr.msk.f32.mxu0 %vm373_vm0, %v4994_v57 }
 0x6f2   : > { %4206 = vmatmul.mubr.msk.f32.gmra.mrb[66].mxu0 %vm373_vm0, %v4996_v55  ;;  %v5006_v12 = vadd.f32 %v3615_v63, %v2209_v25 }
 0x6f3   : > { %v5004_v4 = vadd.f32 %v3615_v63, %v2208_v28  ;;  %v4185_v3 = vpop.f32.mrb[54].mxu1 }
 0x6f4   : > { %v2211_v30 = vadd.f32 %v4185_v3, %v4780_v21  ;;  %v2155_v32 = vpop.f32.mrb[55].mxu1 }
 0x6f5   : > { %v2210_v33 = vadd.f32 %v2155_v32, %v4778_v7  ;;  %4208 = vmatprep.mubr.msk.f32.mxu0 %vm373_vm0, %v5004_v4 }
 0x6f6   : > { %4209 = vmatmul.mubr.msk.f32.gmra.mrb[68].mxu0 %vm373_vm0, %v5006_v12  ;;  %v5016_v14 = vadd.f32 %v3615_v63, %v2211_v30 }
 0x6f7   : > { %v5014_v5 = vadd.f32 %v3615_v63, %v2210_v33  ;;  %v4188_v1 = vpop.f32.mrb[56].mxu1 }
 0x6f8   : > { %v2213_v35 = vadd.f32 %v4188_v1, %v4790_v54  ;;  %v2165_v36 = vpop.f32.mrb[57].mxu1 }
 0x6f9   : > { %v2212_v37 = vadd.f32 %v2165_v36, %v4788_v9  ;;  %4211 = vmatprep.mubr.msk.f32.mxu0 %vm373_vm0, %v5014_v5 }
 0x6fa   : > { %4212 = vmatmul.mubr.msk.f32.gmra.mrb[70].mxu0 %vm373_vm0, %v5016_v14  ;;  %v5026_v2 = vadd.f32 %v3615_v63, %v2213_v35 }
 0x6fb   : > { %v5024_v7 = vadd.f32 %v3615_v63, %v2212_v37  ;;  %v4191_v21 = vpop.f32.mrb[58].mxu1 }
 0x6fc   : > { %v2215_v17 = vadd.f32 %v4191_v21, %v4800_v29  ;;  %v2175_v38 = vpop.f32.mrb[59].mxu1 }
 0x6fd   : > { %v2214_v39 = vadd.f32 %v2175_v38, %v4798_v11  ;;  %4214 = vmatprep.mubr.msk.f32.mxu0 %vm373_vm0, %v5024_v7 }
 0x6fe   : > { %4215 = vmatmul.mubr.msk.f32.gmra.mrb[72].mxu0 %vm373_vm0, %v5026_v2  ;;  %v5036_v40 = vadd.f32 %v3615_v63, %v2215_v17 }
 0x6ff   : > { %v5034_v9 = vadd.f32 %v3615_v63, %v2214_v39  ;;  %v4194_v54 = vpop.f32.mrb[60].mxu1 }
 0x700   : > { %v2217_v41 = vadd.f32 %v4194_v54, %v4810_v34  ;;  %v2185_v43 = vpop.f32.mrb[61].mxu1 }
 0x701   : > { %v2216_v44 = vadd.f32 %v2185_v43, %v4808_v13  ;;  %4217 = vmatprep.mubr.msk.f32.mxu0 %vm373_vm0, %v5034_v9 }
 0x702   : > { %4218 = vmatmul.mubr.msk.f32.gmra.mrb[74].mxu0 %vm373_vm0, %v5036_v40  ;;  %v5046_v45 = vadd.f32 %v3615_v63, %v2217_v41 }
 0x703   : > { %v5044_v11 = vadd.f32 %v3615_v63, %v2216_v44  ;;  %v4197_v29 = vpop.f32.mrb[62].mxu1 }
 0x704   : > { %v2219_v26 = vadd.f32 %v4197_v29, %v4820_v16  ;;  %v2195_v46 = vpop.f32.mrb[63].mxu1  ;;  %v3657_v16 = vld [vmem:[%s5375_s3 + $0xa8] sm:$0xff] }
 0x705   : > { %v2218_v47 = vadd.f32 %v2195_v46, %v4818_v15  ;;  %4220 = vmatprep.mubr.msk.f32.mxu0 %vm373_vm0, %v5044_v11  ;;  %v3656_v15 = vld [vmem:[%s5375_s3 + $0xa0] sm:$0xff] }
 0x706   : > { %4221 = vmatmul.mubr.msk.f32.gmra.mrb[76].mxu0 %vm373_vm0, %v5046_v45  ;;  %v5056_v34 = vadd.f32 %v3615_v63, %v2219_v26  ;;  %v4390_v49 = vpack.c.bf16 %v3657_v16, %v3656_v15 }
 0x707   : > { %v5054_v13 = vadd.f32 %v3615_v63, %v2218_v47 }
 0x708   : > { %4391 = vmatprep.subr.bf16.mxu0 %v4390_v49 }
 0x709   : > { %4223 = vmatprep.mubr.msk.f32.mxu0 %vm373_vm0, %v5054_v13  ;;  %4393 = vmatpush3.bf16.msra.mxu0 %v4390_v49 }
 0x70a   : > { %4224 = vmatmul.mubr.msk.f32.gmra.mrb[78].mxu0 %vm373_vm0, %v5056_v34  ;;  %4395 = vmatprep.subr.bf16.mxu0 %v4394_v50 }
 0x70d   : > { %4397 = vmatpush3.bf16.msra.mxu0 %v4394_v50 }
 0x7c1   : > { %v4204_v52 = vpop.f32.mrb[64].mxu0 }
 0x7c2   : > { %v2369_v53 = vadd.f32 %v4204_v52, %v5077_v51  ;;  %v2363_v56 = vpop.f32.mrb[65].mxu0 }
 0x7c3   : > { %v2364_v18 = vadd.f32 %v5077_v51, %v2363_v56 }
 0x7c4   : > { %v2443_v58 = vmul.f32 0.2, %v2369_v53 }
 0x7c5   : > { %v2442_v59 = vmul.f32 0.2, %v2364_v18  ;;  %v4207_v60 = vpop.f32.mrb[66].mxu0 }
 0x7c6   : > { %v2379_v61 = vadd.f32 %v4207_v60, %v5077_v51  ;;  %v2373_v42 = vpop.f32.mrb[67].mxu0  ;;  %v2459_v0 = vmax.f32 %v2369_v53, %v2443_v58 }
 0x7c7   : > { %v2458_v62 = vmax.f32 %v2364_v18, %v2442_v59  ;;  %v2374_v63 = vadd.f32 %v5077_v51, %v2373_v42 }
 0x7c8   : > { %v2445_v6 = vmul.f32 0.2, %v2379_v61 }
 0x7c9   : > { %v2444_v20 = vmul.f32 0.2, %v2374_v63  ;;  %v4210_v22 = vpop.f32.mrb[68].mxu0  ;;  %4234 = vmatprep.mubr.msk.f32.mxu1 %vm608_vm1, %v2458_v62 }
 0x7ca   : > { %v2389_v23 = vadd.f32 %v4210_v22, %v5077_v51  ;;  %v2383_v24 = vpop.f32.mrb[69].mxu0  ;;  %4235 = vmatmul.mubr.msk.f32.vlgmr.msra.gmra.mrb[64].mxu1 %vm608_vm1, %v2459_v0  ;;  %v2461_v27 = vmax.f32 %v2379_v61, %v2445_v6 }
 0x7cb   : > { %v2460_v10 = vmax.f32 %v2374_v63, %v2444_v20  ;;  %v2384_v25 = vadd.f32 %v5077_v51, %v2383_v24 }
 0x7cc   : > { %v2447_v28 = vmul.f32 0.2, %v2389_v23 }
 0x7cd   : > { %v2446_v3 = vmul.f32 0.2, %v2384_v25  ;;  %v4213_v30 = vpop.f32.mrb[70].mxu0  ;;  %4237 = vmatprep.mubr.msk.f32.mxu1 %vm608_vm1, %v2460_v10  ;;  %v3677_v10 = vld [vmem:[%s5377_s5 + $0x40] sm:$0xff] }
 0x7ce   : > { %v2399_v32 = vadd.f32 %v4213_v30, %v5077_v51  ;;  %v2393_v33 = vpop.f32.mrb[71].mxu0  ;;  %4238 = vmatmul.mubr.msk.f32.gmra.mrb[66].mxu1 %vm608_vm1, %v2461_v27  ;;  %v2463_v36 = vmax.f32 %v2389_v23, %v2447_v28  ;;  %v3680_v28 = vld [vmem:[%s5377_s5 + $0x58] sm:$0xff]  ;;  %v5126_v30 = vld [vmem:[%s5376_s4 + $0x4] ss:$0 sm:$0xff] }
 0x7cf   : > { %v2462_v1 = vmax.f32 %v2384_v25, %v2446_v3  ;;  %v2394_v35 = vadd.f32 %v5077_v51, %v2393_v33  ;;  %v3679_v25 = vld [vmem:[%s5377_s5 + $0x50] sm:$0xff] }
 0x7d0   : > { %v2449_v37 = vmul.f32 0.2, %v2399_v32  ;;  %v4402_v3 = vpack.c.bf16 %v3680_v28, %v3679_v25 }
 0x7d1   : > { %v2448_v21 = vmul.f32 0.2, %v2394_v35  ;;  %v4216_v17 = vpop.f32.mrb[72].mxu0  ;;  %4240 = vmatprep.mubr.msk.f32.mxu1 %vm608_vm1, %v2462_v1 }
 0x7d2   : > { %v2409_v38 = vadd.f32 %v4216_v17, %v5077_v51  ;;  %v2403_v39 = vpop.f32.mrb[73].mxu0  ;;  %4241 = vmatmul.mubr.msk.f32.gmra.mrb[68].mxu1 %vm608_vm1, %v2463_v36  ;;  %v2465_v43 = vmax.f32 %v2399_v32, %v2449_v37 }
 0x7d3   : > { %v2464_v54 = vmax.f32 %v2394_v35, %v2448_v21  ;;  %v2404_v41 = vadd.f32 %v5077_v51, %v2403_v39 }
 0x7d4   : > { %v2451_v44 = vmul.f32 0.2, %v2409_v38 }
 0x7d5   : > { %v2450_v29 = vmul.f32 0.2, %v2404_v41  ;;  %v4219_v26 = vpop.f32.mrb[74].mxu0  ;;  %4243 = vmatprep.mubr.msk.f32.mxu1 %vm608_vm1, %v2464_v54 }
 0x7d6   : > { %v2419_v46 = vadd.f32 %v4219_v26, %v5077_v51  ;;  %v2413_v47 = vpop.f32.mrb[75].mxu0  ;;  %4244 = vmatmul.mubr.msk.f32.gmra.mrb[70].mxu1 %vm608_vm1, %v2465_v43  ;;  %v2467_v48 = vmax.f32 %v2409_v38, %v2451_v44 }
 0x7d7   : > { %v2466_v15 = vmax.f32 %v2404_v41, %v2450_v29  ;;  %v2414_v16 = vadd.f32 %v5077_v51, %v2413_v47 }
 0x7d8   : > { %v2453_v49 = vmul.f32 0.2, %v2419_v46 }
 0x7d9   : > { %v2452_v31 = vmul.f32 0.2, %v2414_v16  ;;  %v4222_v50 = vpop.f32.mrb[76].mxu0  ;;  %4246 = vmatprep.mubr.msk.f32.mxu1 %vm608_vm1, %v2466_v15 }
 0x7da   : > { %v2429_v52 = vadd.f32 %v4222_v50, %v5077_v51  ;;  %v2423_v53 = vpop.f32.mrb[77].mxu0  ;;  %4247 = vmatmul.mubr.msk.f32.gmra.mrb[72].mxu1 %vm608_vm1, %v2467_v48  ;;  %v2469_v58 = vmax.f32 %v2419_v46, %v2453_v49 }
 0x7db   : > { %v2468_v56 = vmax.f32 %v2414_v16, %v2452_v31  ;;  %v2424_v18 = vadd.f32 %v5077_v51, %v2423_v53 }
 0x7dc   : > { %v2455_v59 = vmul.f32 0.2, %v2429_v52 }
 0x7dd   : > { %v2454_v60 = vmul.f32 0.2, %v2424_v18  ;;  %v4225_v61 = vpop.f32.mrb[78].mxu0  ;;  %4249 = vmatprep.mubr.msk.f32.mxu1 %vm608_vm1, %v2468_v56 }
 0x7de   : > { %v2439_v42 = vadd.f32 %v4225_v61, %v5077_v51  ;;  %v2433_v62 = vpop.f32.mrb[79].mxu0  ;;  %4250 = vmatmul.mubr.msk.f32.gmra.mrb[74].mxu1 %vm608_vm1, %v2469_v58  ;;  %v2471_v6 = vmax.f32 %v2429_v52, %v2455_v59 }
 0x7df   : > { %v2470_v63 = vmax.f32 %v2424_v18, %v2454_v60  ;;  %v2434_v0 = vadd.f32 %v5077_v51, %v2433_v62  ;;  %v3678_v51 = vld [vmem:[%s5377_s5 + $0x48] sm:$0xff] }
 0x7e0   : > { %v2457_v20 = vmul.f32 0.2, %v2439_v42  ;;  %v4398_v27 = vpack.c.bf16 %v3678_v51, %v3677_v10 }
 0x7e1   : > { %v2456_v22 = vmul.f32 0.2, %v2434_v0  ;;  %4252 = vmatprep.mubr.msk.f32.mxu1 %vm608_vm1, %v2470_v63 }
 0x7e2   : > { %4253 = vmatmul.mubr.msk.f32.gmra.mrb[76].mxu1 %vm608_vm1, %v2471_v6  ;;  %v2473_v24 = vmax.f32 %v2439_v42, %v2457_v20  ;;  %4399 = vmatprep.subr.bf16.mxu1 %v4398_v27 }
 0x7e3   : > { %v2472_v23 = vmax.f32 %v2434_v0, %v2456_v22  ;;  %4401 = vmatpush3.bf16.msra.mxu1 %v4398_v27 }
 0x7e4   : > { %4403 = vmatprep.subr.bf16.mxu1 %v4402_v3 }
 0x7e5   : > { %4255 = vmatprep.mubr.msk.f32.mxu1 %vm608_vm1, %v2472_v23 }
 0x7e6   : > { %4256 = vmatmul.mubr.msk.f32.gmra.mrb[78].mxu1 %vm608_vm1, %v2473_v24 }
 0x7e7   : > { %4405 = vmatpush3.bf16.msra.mxu1 %v4402_v3 }
 0x89d   : > { %v4236_v32 = vpop.f32.mrb[64].mxu1 }
 0x89e   : > { %v2604_v33 = vadd.f32 %v4236_v32, %v5126_v30  ;;  %v2598_v1 = vpop.f32.mrb[65].mxu1 }
 0x89f   : > { %v2599_v35 = vadd.f32 %v5126_v30, %v2598_v1 }
 0x8a0   : > { %v2678_v36 = vmul.f32 0.2, %v2604_v33 }
 0x8a1   : > { %v2677_v37 = vmul.f32 0.2, %v2599_v35  ;;  %v4239_v21 = vpop.f32.mrb[66].mxu1 }
 0x8a2   : > { %v2614_v17 = vadd.f32 %v4239_v21, %v5126_v30  ;;  %v2608_v38 = vpop.f32.mrb[67].mxu1  ;;  %v2694_v41 = vmax.f32 %v2604_v33, %v2678_v36 }
 0x8a3   : > { %v2693_v39 = vmax.f32 %v2599_v35, %v2677_v37  ;;  %v2609_v54 = vadd.f32 %v5126_v30, %v2608_v38 }
 0x8a4   : > { %v2680_v43 = vmul.f32 0.2, %v2614_v17 }
 0x8a5   : > { %v2679_v44 = vmul.f32 0.2, %v2609_v54  ;;  %v4242_v29 = vpop.f32.mrb[68].mxu1  ;;  %4266 = vmatprep.mubr.msk.f32.mxu0 %vm608_vm1, %v2693_v39 }
 0x8a6   : > { %v2624_v26 = vadd.f32 %v4242_v29, %v5126_v30  ;;  %v2618_v46 = vpop.f32.mrb[69].mxu1  ;;  %4267 = vmatmul.mubr.msk.f32.vlgmr.msra.gmra.mrb[80].mxu0 %vm608_vm1, %v2694_v41  ;;  %v2696_v16 = vmax.f32 %v2614_v17, %v2680_v43 }
 0x8a7   : > { %v2695_v47 = vmax.f32 %v2609_v54, %v2679_v44  ;;  %v2619_v15 = vadd.f32 %v5126_v30, %v2618_v46 }
 0x8a8   : > { %v2682_v48 = vmul.f32 0.2, %v2624_v26 }
 0x8a9   : > { %v2681_v49 = vmul.f32 0.2, %v2619_v15  ;;  %v4245_v31 = vpop.f32.mrb[70].mxu1  ;;  %4269 = vmatprep.mubr.msk.f32.mxu0 %vm608_vm1, %v2695_v47  ;;  %v5163_v47 = vld [vmem:[%s5379_s7] sm:$0x1] }
 0x8aa   : > { %v2634_v50 = vadd.f32 %v4245_v31, %v5126_v30  ;;  %v2628_v52 = vpop.f32.mrb[71].mxu1  ;;  %4270 = vmatmul.mubr.msk.f32.gmra.mrb[82].mxu0 %vm608_vm1, %v2696_v16  ;;  %v2698_v18 = vmax.f32 %v2624_v26, %v2682_v48 }
 0x8ab   : > { %v2697_v53 = vmax.f32 %v2619_v15, %v2681_v49  ;;  %v2629_v56 = vadd.f32 %v5126_v30, %v2628_v52  ;;  %v5169_v15 = vld [vmem:[%s5376_s4 + $0x5] ss:$0 sm:$0xff] }
 0x8ac   : > { %v2684_v58 = vmul.f32 0.2, %v2634_v50 }
 0x8ad   : > { %v2683_v59 = vmul.f32 0.2, %v2629_v56  ;;  %v4248_v60 = vpop.f32.mrb[72].mxu1  ;;  %4272 = vmatprep.mubr.msk.f32.mxu0 %vm608_vm1, %v2697_v53 }
 0x8ae   : > { %v2644_v61 = vadd.f32 %v4248_v60, %v5126_v30  ;;  %v2638_v42 = vpop.f32.mrb[73].mxu1  ;;  %4273 = vmatmul.mubr.msk.f32.gmra.mrb[84].mxu0 %vm608_vm1, %v2698_v18  ;;  %v2700_v0 = vmax.f32 %v2634_v50, %v2684_v58 }
 0x8af   : > { %v2699_v62 = vmax.f32 %v2629_v56, %v2683_v59  ;;  %v2639_v63 = vadd.f32 %v5126_v30, %v2638_v42 }
 0x8b0   : > { %v2686_v6 = vmul.f32 0.2, %v2644_v61 }
 0x8b1   : > { %v2685_v20 = vmul.f32 0.2, %v2639_v63  ;;  %v4251_v22 = vpop.f32.mrb[74].mxu1  ;;  %4275 = vmatprep.mubr.msk.f32.mxu0 %vm608_vm1, %v2699_v62 }
 0x8b2   : > { %v2654_v23 = vadd.f32 %v4251_v22, %v5126_v30  ;;  %v2648_v24 = vpop.f32.mrb[75].mxu1  ;;  %4276 = vmatmul.mubr.msk.f32.gmra.mrb[86].mxu0 %vm608_vm1, %v2700_v0  ;;  %v2702_v25 = vmax.f32 %v2644_v61, %v2686_v6 }
 0x8b3   : > { %v2701_v10 = vmax.f32 %v2639_v63, %v2685_v20  ;;  %v2649_v51 = vadd.f32 %v5126_v30, %v2648_v24 }
 0x8b4   : > { %v2688_v27 = vmul.f32 0.2, %v2654_v23 }
 0x8b5   : > { %v2687_v28 = vmul.f32 0.2, %v2649_v51  ;;  %v4254_v3 = vpop.f32.mrb[76].mxu1  ;;  %4278 = vmatprep.mubr.msk.f32.mxu0 %vm608_vm1, %v2701_v10 }
 0x8b6   : > { %v2664_v32 = vadd.f32 %v4254_v3, %v5126_v30  ;;  %v2658_v33 = vpop.f32.mrb[77].mxu1  ;;  %4279 = vmatmul.mubr.msk.f32.gmra.mrb[88].mxu0 %vm608_vm1, %v2702_v25  ;;  %v2704_v36 = vmax.f32 %v2654_v23, %v2688_v27 }
 0x8b7   : > { %v2703_v1 = vmax.f32 %v2649_v51, %v2687_v28  ;;  %v2659_v35 = vadd.f32 %v5126_v30, %v2658_v33 }
 0x8b8   : > { %v2690_v37 = vmul.f32 0.2, %v2664_v32 }
 0x8b9   : > { %v2689_v21 = vmul.f32 0.2, %v2659_v35  ;;  %v4257_v17 = vpop.f32.mrb[78].mxu1  ;;  %4281 = vmatprep.mubr.msk.f32.mxu0 %vm608_vm1, %v2703_v1 }
 0x8ba   : > { %v2674_v38 = vadd.f32 %v4257_v17, %v5126_v30  ;;  %v2668_v39 = vpop.f32.mrb[79].mxu1  ;;  %4282 = vmatmul.mubr.msk.f32.gmra.mrb[90].mxu0 %vm608_vm1, %v2704_v36  ;;  %v2706_v43 = vmax.f32 %v2664_v32, %v2690_v37 }
 0x8bb   : > { %v2705_v54 = vmax.f32 %v2659_v35, %v2689_v21  ;;  %v2669_v41 = vadd.f32 %v5126_v30, %v2668_v39  ;;  %v3205_v30 = vsel %vm3204_vm2, %v5163_v47, 0.0 }
 0x8bc   : > { %v2692_v44 = vmul.f32 0.2, %v2674_v38  ;;  %3206 = vadd.xlane.f32.xlu0 %v3205_v30 }
 0x8bd   : > { %v2691_v29 = vmul.f32 0.2, %v2669_v41  ;;  %4284 = vmatprep.mubr.msk.f32.mxu0 %vm608_vm1, %v2705_v54 }
 0x8be   : > { %4285 = vmatmul.mubr.msk.f32.gmra.mrb[92].mxu0 %vm608_vm1, %v2706_v43  ;;  %v2708_v46 = vmax.f32 %v2674_v38, %v2692_v44 }
 0x8bf   : > { %v2707_v26 = vmax.f32 %v2669_v41, %v2691_v29 }
 0x8c1   : > { %4287 = vmatprep.mubr.msk.f32.mxu0 %vm608_vm1, %v2707_v26 }
 0x8c2   : > { %4288 = vmatmul.mubr.msk.f32.gmra.mrb[94].mxu0 %vm608_vm1, %v2708_v46 }
 0x979   : > { %v4268_v16 = vpop.f32.mrb[80].mxu0 }
 0x97a   : > { %v2839_v48 = vadd.f32 %v4268_v16, %v5169_v15  ;;  %v2833_v49 = vpop.f32.mrb[81].mxu0 }
 0x97b   : > { %v2834_v31 = vadd.f32 %v5169_v15, %v2833_v49 }
 0x97c   : > { %v2913_v50 = vmul.f32 0.2, %v2839_v48 }
 0x97d   : > { %v2912_v52 = vmul.f32 0.2, %v2834_v31  ;;  %v4271_v53 = vpop.f32.mrb[82].mxu0 }
 0x97e   : > { %v2849_v56 = vadd.f32 %v4271_v53, %v5169_v15  ;;  %v2843_v18 = vpop.f32.mrb[83].mxu0  ;;  %v2929_v60 = vmax.f32 %v2839_v48, %v2913_v50 }
 0x97f   : > { %v2928_v58 = vmax.f32 %v2834_v31, %v2912_v52  ;;  %v2844_v59 = vadd.f32 %v5169_v15, %v2843_v18 }
 0x980   : > { %v2915_v61 = vmul.f32 0.2, %v2849_v56 }
 0x981   : > { %v2914_v42 = vmul.f32 0.2, %v2844_v59  ;;  %v4274_v62 = vpop.f32.mrb[84].mxu0  ;;  %4298 = vmatprep.mubr.msk.f32.mxu1 %vm608_vm1, %v2928_v58 }
 0x982   : > { %v2859_v63 = vadd.f32 %v4274_v62, %v5169_v15  ;;  %v2853_v0 = vpop.f32.mrb[85].mxu0  ;;  %4299 = vmatmul.mubr.msk.f32.vlgmr.msra.gmra.mrb[80].mxu1 %vm608_vm1, %v2929_v60  ;;  %v2931_v22 = vmax.f32 %v2849_v56, %v2915_v61 }
 0x983   : > { %v2930_v6 = vmax.f32 %v2844_v59, %v2914_v42  ;;  %v2854_v20 = vadd.f32 %v5169_v15, %v2853_v0 }
 0x984   : > { %v2917_v23 = vmul.f32 0.2, %v2859_v63 }
 0x985   : > { %v2916_v24 = vmul.f32 0.2, %v2854_v20  ;;  %v4277_v10 = vpop.f32.mrb[86].mxu0  ;;  %4301 = vmatprep.mubr.msk.f32.mxu1 %vm608_vm1, %v2930_v6 }
 0x986   : > { %v2869_v51 = vadd.f32 %v4277_v10, %v5169_v15  ;;  %v2863_v25 = vpop.f32.mrb[87].mxu0  ;;  %4302 = vmatmul.mubr.msk.f32.gmra.mrb[82].mxu1 %vm608_vm1, %v2931_v22  ;;  %v2933_v3 = vmax.f32 %v2859_v63, %v2917_v23 }
 0x987   : > { %v2932_v27 = vmax.f32 %v2854_v20, %v2916_v24  ;;  %v2864_v28 = vadd.f32 %v5169_v15, %v2863_v25  ;;  %v3207_v20 = vpop.xlane.xlu0 %3206  ;;  %v3180_v25 = vmul.f32 1.442695, %v5163_v47 }
 0x988   : > { %v2919_v32 = vmul.f32 0.2, %v2869_v51  ;;  %v3208_v22 = vrot.slane %v3207_v20, 4 }
 0x989   : > { %v2918_v33 = vmul.f32 0.2, %v2864_v28  ;;  %v4280_v1 = vpop.f32.mrb[88].mxu0  ;;  %4304 = vmatprep.mubr.msk.f32.mxu1 %vm608_vm1, %v2932_v27  ;;  %4416 = vpow2.f32 %v3180_v25  ;;  %v3183_v27 = vlaneseq }
 0x98a   : > { %v2879_v35 = vadd.f32 %v4280_v1, %v5169_v15  ;;  %v2873_v36 = vpop.f32.mrb[89].mxu0  ;;  %4305 = vmatmul.mubr.msk.f32.gmra.mrb[84].mxu1 %vm608_vm1, %v2933_v3  ;;  %v2935_v17 = vmax.f32 %v2869_v51, %v2919_v32  ;;  %v3209_v23 = vadd.f32 %v3208_v22, %v3207_v20  ;;  %v5207_v1 = vld [vmem:[%s5378_s6 + $0x2] ss:$0 sm:$0xff] }
 0x98b   : > { %v2934_v37 = vmax.f32 %v2864_v28, %v2918_v33  ;;  %v2874_v21 = vadd.f32 %v5169_v15, %v2873_v36  ;;  %v3184_v28 = vshrl.u32 %v3183_v27, 7 }
 0x98c   : > { %v2921_v38 = vmul.f32 0.2, %v2879_v35  ;;  %v3210_v24 = vrot.slane %v3209_v23, 2 }
 0x98d   : > { %v2920_v39 = vmul.f32 0.2, %v2874_v21  ;;  %v4283_v54 = vpop.f32.mrb[90].mxu0  ;;  %4307 = vmatprep.mubr.msk.f32.mxu1 %vm608_vm1, %v2934_v37  ;;  %v3185_v3 = vsub.s32 0, %v3184_v28 }
 0x98e   : > { %v2889_v41 = vadd.f32 %v4283_v54, %v5169_v15  ;;  %v2883_v43 = vpop.f32.mrb[91].mxu0  ;;  %4308 = vmatmul.mubr.msk.f32.gmra.mrb[86].mxu1 %vm608_vm1, %v2935_v17  ;;  %v2937_v26 = vmax.f32 %v2879_v35, %v2921_v38  ;;  %v3211_v10 = vadd.f32 %v3210_v24, %v3209_v23 }
 0x98f   : > { %v2936_v44 = vmax.f32 %v2874_v21, %v2920_v39  ;;  %v2884_v29 = vadd.f32 %v5169_v15, %v2883_v43 }
 0x990   : > { %v2923_v46 = vmul.f32 0.2, %v2889_v41  ;;  %v3212_v51 = vrot.slane %v3211_v10, 1 }
 0x991   : > { %v2922_v30 = vmul.f32 0.2, %v2884_v29  ;;  %v4286_v16 = vpop.f32.mrb[92].mxu0  ;;  %4310 = vmatprep.mubr.msk.f32.mxu1 %vm608_vm1, %v2936_v44 }
 0x992   : > { %v2899_v48 = vadd.f32 %v4286_v16, %v5169_v15  ;;  %v2893_v49 = vpop.f32.mrb[93].mxu0  ;;  %4311 = vmatmul.mubr.msk.f32.gmra.mrb[88].mxu1 %vm608_vm1, %v2937_v26  ;;  %v2939_v52 = vmax.f32 %v2889_v41, %v2923_v46 }
 0x993   : > { %v2938_v31 = vmax.f32 %v2884_v29, %v2922_v30  ;;  %v2894_v50 = vadd.f32 %v5169_v15, %v2893_v49  ;;  %v4417_v32 = vpop.eup %4416 }
 0x994   : > { %v2925_v53 = vmul.f32 0.2, %v2899_v48  ;;  %v5209_v35 = vrot.slane %v4417_v32, %v3185_v3 }
 0x995   : > { %v2924_v56 = vmul.f32 0.2, %v2894_v50  ;;  %v4289_v18 = vpop.f32.mrb[94].mxu0  ;;  %4313 = vmatprep.mubr.msk.f32.mxu1 %vm608_vm1, %v2938_v31 }
 0x996   : > { %v2909_v58 = vadd.f32 %v4289_v18, %v5169_v15  ;;  %v2903_v59 = vpop.f32.mrb[95].mxu0  ;;  %4314 = vmatmul.mubr.msk.f32.gmra.mrb[90].mxu1 %vm608_vm1, %v2939_v52  ;;  %v2941_v42 = vmax.f32 %v2899_v48, %v2925_v53 }
 0x997   : > { %v2940_v60 = vmax.f32 %v2894_v50, %v2924_v56  ;;  %v2904_v61 = vadd.f32 %v5169_v15, %v2903_v59  ;;  %v3213_v15 = vadd.f32 %v3212_v51, %v3211_v10 }
 0x998   : > { %v2927_v62 = vmul.f32 0.2, %v2909_v58 }
 0x999   : > { %v2926_v63 = vmul.f32 0.2, %v2904_v61  ;;  %4316 = vmatprep.mubr.msk.f32.mxu1 %vm608_vm1, %v2940_v60  ;;  %4406 = vpush %v3213_v15 }
 0x99a   : > { %4317 = vmatmul.mubr.msk.f32.gmra.mrb[92].mxu1 %vm608_vm1, %v2941_v42  ;;  %v2943_v6 = vmax.f32 %v2909_v58, %v2927_v62 }
 0x99b   : > { %v2942_v0 = vmax.f32 %v2904_v61, %v2926_v63 }
 0x99d   : > { %4319 = vmatprep.mubr.msk.f32.mxu1 %vm608_vm1, %v2942_v0 }
 0x99e   : > { %4320 = vmatmul.mubr.msk.f32.gmra.mrb[94].mxu1 %vm608_vm1, %v2943_v6 }
 0x9ca   : > { %s4407_s14 = spop %4406 }
 0xa55   : > { %v4300_v33 = vpop.f32.mrb[80].mxu1 }
 0xa56   : > { %v3143_v36 = vadd.f32 %v4300_v33, %v4986_v8  ;;  %v3063_v37 = vpop.f32.mrb[81].mxu1 }
 0xa57   : > { %v3142_v21 = vadd.f32 %v3063_v37, %v4984_v19 }
 0xa58   : > { %v3164_v47 = vadd.f32 %v5207_v1, %v3143_v36 }
 0xa59   : > { %v3163_v17 = vadd.f32 %v5207_v1, %v3142_v21  ;;  %v4303_v38 = vpop.f32.mrb[82].mxu1 }
 0xa5a   : > { %v3145_v39 = vadd.f32 %v4303_v38, %v4996_v55  ;;  %v3073_v54 = vpop.f32.mrb[83].mxu1  ;;  %v3189_v8 = vmul.f32 %v5209_v35, %v3164_v47 }
 0xa5b   : > { %v3144_v41 = vadd.f32 %v3073_v54, %v4994_v57  ;;  %v3188_v19 = vmul.f32 %v5209_v35, %v3163_v17 }
 0xa5c   : > { %v3166_v43 = vadd.f32 %v5207_v1, %v3145_v39  ;;  %v3232_v44 = vmul.f32 %v3189_v8, %v3189_v8  ;;  %3216 = vst.msk [vmem:[%s5218_s13 + $0x8] sm:$0xff] %vm373_vm0, %v3189_v8 }
 0xa5d   : > { %v3165_v29 = vadd.f32 %v5207_v1, %v3144_v41  ;;  %v4306_v26 = vpop.f32.mrb[84].mxu1  ;;  %v3231_v46 = vmul.f32 %v3188_v19, %v3188_v19  ;;  %3215 = vst.msk [vmem:[%s5218_s13] sm:$0xff] %vm373_vm0, %v3188_v19 }
 0xa5e   : > { %v3147_v55 = vadd.f32 %v4306_v26, %v5006_v12  ;;  %v3083_v30 = vpop.f32.mrb[85].mxu1  ;;  %v3250_v57 = vsel %vm373_vm0, %v3232_v44, 0.0  ;;  %v3191_v16 = vmul.f32 %v5209_v35, %v3166_v43 }
 0xa5f   : > { %v3146_v48 = vadd.f32 %v3083_v30, %v5004_v4  ;;  %3251 = vadd.xlane.f32.xlu1 %v3250_v57  ;;  %v3247_v49 = vsel %vm373_vm0, %v3231_v46, 0.0  ;;  %v3190_v31 = vmul.f32 %v5209_v35, %v3165_v29 }
 0xa60   : > { %v3168_v50 = vadd.f32 %v5207_v1, %v3147_v55  ;;  %3248 = vadd.xlane.f32.xlu0 %v3247_v49  ;;  %v3234_v52 = vmul.f32 %v3191_v16, %v3191_v16  ;;  %3218 = vst.msk [vmem:[%s5218_s13 + $0x18] sm:$0xff] %vm373_vm0, %v3191_v16 }
 0xa61   : > { %v3167_v12 = vadd.f32 %v5207_v1, %v3146_v48  ;;  %v4309_v53 = vpop.f32.mrb[86].mxu1  ;;  %v3233_v56 = vmul.f32 %v3190_v31, %v3190_v31  ;;  %3217 = vst.msk [vmem:[%s5218_s13 + $0x10] sm:$0xff] %vm373_vm0, %v3190_v31 }
 0xa62   : > { %v3149_v4 = vadd.f32 %v4309_v53, %v5016_v14  ;;  %v3093_v18 = vpop.f32.mrb[87].mxu1  ;;  %v3256_v58 = vsel %vm373_vm0, %v3234_v52, 0.0  ;;  %v3193_v59 = vmul.f32 %v5209_v35, %v3168_v50 }
 0xa63   : > { %v3148_v60 = vadd.f32 %v3093_v18, %v5014_v5  ;;  %v3253_v61 = vsel %vm373_vm0, %v3233_v56, 0.0  ;;  %v3192_v42 = vmul.f32 %v5209_v35, %v3167_v12 }
 0xa64   : > { %v3170_v62 = vadd.f32 %v5207_v1, %v3149_v4  ;;  %3257 = vadd.xlane.f32.xlu0 %v3256_v58  ;;  %3254 = vadd.xlane.f32.xlu1 %v3253_v61  ;;  %v3236_v63 = vmul.f32 %v3193_v59, %v3193_v59  ;;  %3220 = vst.msk [vmem:[%s5218_s13 + $0x28] sm:$0xff] %vm373_vm0, %v3193_v59 }
 0xa65   : > { %v3169_v14 = vadd.f32 %v5207_v1, %v3148_v60  ;;  %v4312_v0 = vpop.f32.mrb[88].mxu1  ;;  %v3235_v6 = vmul.f32 %v3192_v42, %v3192_v42  ;;  %3219 = vst.msk [vmem:[%s5218_s13 + $0x20] sm:$0xff] %vm373_vm0, %v3192_v42 }
 0xa66   : > { %v3151_v5 = vadd.f32 %v4312_v0, %v5026_v2  ;;  %v3103_v20 = vpop.f32.mrb[89].mxu1  ;;  %v3262_v22 = vsel %vm373_vm0, %v3236_v63, 0.0  ;;  %v3195_v23 = vmul.f32 %v5209_v35, %v3170_v62  ;;  %v5313_v62 = vstv %s4407_s14 }
 0xa67   : > { %v3150_v24 = vadd.f32 %v3103_v20, %v5024_v7  ;;  %v3259_v10 = vsel %vm373_vm0, %v3235_v6, 0.0  ;;  %v3194_v51 = vmul.f32 %v5209_v35, %v3169_v14 }
 0xa68   : > { %v3172_v15 = vadd.f32 %v5207_v1, %v3151_v5  ;;  %3263 = vadd.xlane.f32.xlu0 %v3262_v22  ;;  %3260 = vadd.xlane.f32.xlu1 %v3259_v10  ;;  %v3238_v25 = vmul.f32 %v3195_v23, %v3195_v23  ;;  %3222 = vst.msk [vmem:[%s5218_s13 + $0x38] sm:$0xff] %vm373_vm0, %v3195_v23 }
 0xa69   : > { %v3171_v2 = vadd.f32 %v5207_v1, %v3150_v24  ;;  %v4315_v27 = vpop.f32.mrb[90].mxu1  ;;  %v3237_v28 = vmul.f32 %v3194_v51, %v3194_v51  ;;  %3221 = vst.msk [vmem:[%s5218_s13 + $0x30] sm:$0xff] %vm373_vm0, %v3194_v51 }
 0xa6a   : > { %v3153_v7 = vadd.f32 %v4315_v27, %v5036_v40  ;;  %v3113_v3 = vpop.f32.mrb[91].mxu1  ;;  %v3268_v32 = vsel %vm373_vm0, %v3238_v25, 0.0  ;;  %v3197_v33 = vmul.f32 %v5209_v35, %v3172_v15 }
 0xa6b   : > { %v3152_v36 = vadd.f32 %v3113_v3, %v5034_v9  ;;  %v3265_v37 = vsel %vm373_vm0, %v3237_v28, 0.0  ;;  %v3196_v21 = vmul.f32 %v5209_v35, %v3171_v2 }
 0xa6c   : > { %v3174_v47 = vadd.f32 %v5207_v1, %v3153_v7  ;;  %3269 = vadd.xlane.f32.xlu0 %v3268_v32  ;;  %3266 = vadd.xlane.f32.xlu1 %v3265_v37  ;;  %v3240_v17 = vmul.f32 %v3197_v33, %v3197_v33  ;;  %3224 = vst.msk [vmem:[%s5218_s13 + $0x48] sm:$0xff] %vm373_vm0, %v3197_v33 }
 0xa6d   : > { %v3173_v40 = vadd.f32 %v5207_v1, %v3152_v36  ;;  %v4318_v38 = vpop.f32.mrb[92].mxu1  ;;  %v3239_v39 = vmul.f32 %v3196_v21, %v3196_v21  ;;  %3223 = vst.msk [vmem:[%s5218_s13 + $0x40] sm:$0xff] %vm373_vm0, %v3196_v21 }
 0xa6e   : > { %v3155_v9 = vadd.f32 %v4318_v38, %v5046_v45  ;;  %v3123_v54 = vpop.f32.mrb[93].mxu1  ;;  %v3274_v8 = vsel %vm373_vm0, %v3240_v17, 0.0  ;;  %v3199_v41 = vmul.f32 %v5209_v35, %v3174_v47 }
 0xa6f   : > { %v3154_v19 = vadd.f32 %v3123_v54, %v5044_v11  ;;  %v3271_v43 = vsel %vm373_vm0, %v3239_v39, 0.0  ;;  %v3198_v44 = vmul.f32 %v5209_v35, %v3173_v40 }
 0xa70   : > { %v3176_v29 = vadd.f32 %v5207_v1, %v3155_v9  ;;  %3275 = vadd.xlane.f32.xlu0 %v3274_v8  ;;  %3272 = vadd.xlane.f32.xlu1 %v3271_v43  ;;  %v3242_v26 = vmul.f32 %v3199_v41, %v3199_v41  ;;  %3226 = vst.msk [vmem:[%s5218_s13 + $0x58] sm:$0xff] %vm373_vm0, %v3199_v41 }
 0xa71   : > { %v3175_v45 = vadd.f32 %v5207_v1, %v3154_v19  ;;  %v4321_v46 = vpop.f32.mrb[94].mxu1  ;;  %v3241_v55 = vmul.f32 %v3198_v44, %v3198_v44  ;;  %3225 = vst.msk [vmem:[%s5218_s13 + $0x50] sm:$0xff] %vm373_vm0, %v3198_v44 }
 0xa72   : > { %v3157_v11 = vadd.f32 %v4321_v46, %v5056_v34  ;;  %v3133_v30 = vpop.f32.mrb[95].mxu1  ;;  %v3280_v57 = vsel %vm373_vm0, %v3242_v26, 0.0  ;;  %v3201_v16 = vmul.f32 %v5209_v35, %v3176_v29 }
 0xa73   : > { %v3156_v48 = vadd.f32 %v3133_v30, %v5054_v13  ;;  %v3277_v49 = vsel %vm373_vm0, %v3241_v55, 0.0  ;;  %v3200_v31 = vmul.f32 %v5209_v35, %v3175_v45 }
 0xa74   : > { %v3178_v50 = vadd.f32 %v5207_v1, %v3157_v11  ;;  %3281 = vadd.xlane.f32.xlu0 %v3280_v57  ;;  %3278 = vadd.xlane.f32.xlu1 %v3277_v49  ;;  %v3244_v52 = vmul.f32 %v3201_v16, %v3201_v16  ;;  %3228 = vst.msk [vmem:[%s5218_s13 + $0x68] sm:$0xff] %vm373_vm0, %v3201_v16 }
 0xa75   : > { %v3177_v34 = vadd.f32 %v5207_v1, %v3156_v48  ;;  %v3243_v12 = vmul.f32 %v3200_v31, %v3200_v31  ;;  %3227 = vst.msk [vmem:[%s5218_s13 + $0x60] sm:$0xff] %vm373_vm0, %v3200_v31 }
 0xa76   : > { %v3286_v13 = vsel %vm373_vm0, %v3244_v52, 0.0  ;;  %v3203_v53 = vmul.f32 %v5209_v35, %v3178_v50 }
 0xa77   : > { %v3283_v56 = vsel %vm373_vm0, %v3243_v12, 0.0  ;;  %v3202_v4 = vmul.f32 %v5209_v35, %v3177_v34 }
 0xa78   : > { %3287 = vadd.xlane.f32.xlu0 %v3286_v13  ;;  %3284 = vadd.xlane.f32.xlu1 %v3283_v56  ;;  %v3246_v18 = vmul.f32 %v3203_v53, %v3203_v53  ;;  %3230 = vst.msk [vmem:[%s5218_s13 + $0x78] sm:$0xff] %vm373_vm0, %v3203_v53 }
 0xa79   : > { %v3245_v58 = vmul.f32 %v3202_v4, %v3202_v4  ;;  %3229 = vst.msk [vmem:[%s5218_s13 + $0x70] sm:$0xff] %vm373_vm0, %v3202_v4 }
 0xa7a   : > { %v3292_v1 = vsel %vm373_vm0, %v3246_v18, 0.0 }
 0xa7b   : > { %v3289_v59 = vsel %vm373_vm0, %v3245_v58, 0.0 }
 0xa7c   : > { %3293 = vadd.xlane.f32.xlu0 %v3292_v1  ;;  %3290 = vadd.xlane.f32.xlu1 %v3289_v59 }
 0xaec   : > { %v3252_v60 = vpop.xlane.xlu1 %3251 }
 0xaed   : > { %v3296_v61 = vmul.f32 -0.5, %v3252_v60  ;;  %v3249_v42 = vpop.xlane.xlu0 %3248 }
 0xaee   : > { %v3295_v35 = vmul.f32 -0.5, %v3249_v42 }
 0xaef   : > { %v3699_v63 = vadd.f32 -14.703016, %v3296_v61 }
 0xaf0   : > { %v3698_v14 = vadd.f32 -14.703016, %v3295_v35 }
 0xaf1   : > { %v3329_v0 = vadd.f32 %v3699_v63, %v5313_v62  ;;  %v3258_v6 = vpop.xlane.xlu0 %3257  ;;  %v3255_v5 = vpop.xlane.xlu1 %3254 }
 0xaf2   : > { %v3328_v20 = vadd.f32 %v3698_v14, %v5313_v62  ;;  %v3298_v22 = vmul.f32 -0.5, %v3258_v6  ;;  %v3297_v23 = vmul.f32 -0.5, %v3255_v5 }
 0xaf3   : > { %3346 = vst.msk [vmem:[%s5319_s18 + $0x8] sm:$0xff] %vm3344_vm3, %v3329_v0 }
 0xaf4   : > { %3345 = vst.msk [vmem:[%s5319_s18] sm:$0xff] %vm3344_vm3, %v3328_v20  ;;  %v3701_v24 = vadd.f32 -14.703016, %v3298_v22  ;;  %v3700_v10 = vadd.f32 -14.703016, %v3297_v23 }
 0xaf5   : > { %v3264_v51 = vpop.xlane.xlu0 %3263  ;;  %v3261_v15 = vpop.xlane.xlu1 %3260 }
 0xaf6   : > { %v3331_v25 = vadd.f32 %v3701_v24, %v5313_v62  ;;  %v3330_v2 = vadd.f32 %v3700_v10, %v5313_v62  ;;  %v3300_v27 = vmul.f32 -0.5, %v3264_v51  ;;  %v3299_v28 = vmul.f32 -0.5, %v3261_v15 }
 0xaf8   : > { %3348 = vst.msk [vmem:[%s5319_s18 + $0x18] sm:$0xff] %vm3344_vm3, %v3331_v25  ;;  %3347 = vst.msk [vmem:[%s5319_s18 + $0x10] sm:$0xff] %vm3344_vm3, %v3330_v2  ;;  %v3703_v7 = vadd.f32 -14.703016, %v3300_v27  ;;  %v3702_v3 = vadd.f32 -14.703016, %v3299_v28 }
 0xaf9   : > { %v3270_v32 = vpop.xlane.xlu0 %3269  ;;  %v3267_v33 = vpop.xlane.xlu1 %3266 }
 0xafa   : > { %v3333_v36 = vadd.f32 %v3703_v7, %v5313_v62  ;;  %v3332_v37 = vadd.f32 %v3702_v3, %v5313_v62  ;;  %v3302_v21 = vmul.f32 -0.5, %v3270_v32  ;;  %v3301_v47 = vmul.f32 -0.5, %v3267_v33 }
 0xafc   : > { %3350 = vst.msk [vmem:[%s5319_s18 + $0x28] sm:$0xff] %vm3344_vm3, %v3333_v36  ;;  %3349 = vst.msk [vmem:[%s5319_s18 + $0x20] sm:$0xff] %vm3344_vm3, %v3332_v37  ;;  %v3705_v17 = vadd.f32 -14.703016, %v3302_v21  ;;  %v3704_v40 = vadd.f32 -14.703016, %v3301_v47 }
 0xafd   : > { %v3276_v38 = vpop.xlane.xlu0 %3275  ;;  %v3273_v39 = vpop.xlane.xlu1 %3272 }
 0xafe   : > { %v3335_v9 = vadd.f32 %v3705_v17, %v5313_v62  ;;  %v3334_v54 = vadd.f32 %v3704_v40, %v5313_v62  ;;  %v3304_v8 = vmul.f32 -0.5, %v3276_v38  ;;  %v3303_v41 = vmul.f32 -0.5, %v3273_v39 }
 0xb00   : > { %3352 = vst.msk [vmem:[%s5319_s18 + $0x38] sm:$0xff] %vm3344_vm3, %v3335_v9  ;;  %3351 = vst.msk [vmem:[%s5319_s18 + $0x30] sm:$0xff] %vm3344_vm3, %v3334_v54  ;;  %v3707_v19 = vadd.f32 -14.703016, %v3304_v8  ;;  %v3706_v43 = vadd.f32 -14.703016, %v3303_v41 }
 0xb01   : > { %v3282_v44 = vpop.xlane.xlu0 %3281  ;;  %v3279_v29 = vpop.xlane.xlu1 %3278 }
 0xb02   : > { %v3337_v26 = vadd.f32 %v3707_v19, %v5313_v62  ;;  %v3336_v45 = vadd.f32 %v3706_v43, %v5313_v62  ;;  %v3306_v46 = vmul.f32 -0.5, %v3282_v44  ;;  %v3305_v55 = vmul.f32 -0.5, %v3279_v29 }
 0xb04   : > { %3354 = vst.msk [vmem:[%s5319_s18 + $0x48] sm:$0xff] %vm3344_vm3, %v3337_v26  ;;  %3353 = vst.msk [vmem:[%s5319_s18 + $0x40] sm:$0xff] %vm3344_vm3, %v3336_v45  ;;  %v3709_v11 = vadd.f32 -14.703016, %v3306_v46  ;;  %v3708_v30 = vadd.f32 -14.703016, %v3305_v55 }
 0xb05   : > { %v3288_v57 = vpop.xlane.xlu0 %3287  ;;  %v3285_v16 = vpop.xlane.xlu1 %3284 }
 0xb06   : > { %v3339_v48 = vadd.f32 %v3709_v11, %v5313_v62  ;;  %v3338_v49 = vadd.f32 %v3708_v30, %v5313_v62  ;;  %v3308_v31 = vmul.f32 -0.5, %v3288_v57  ;;  %v3307_v50 = vmul.f32 -0.5, %v3285_v16 }
 0xb08   : > { %3356 = vst.msk [vmem:[%s5319_s18 + $0x58] sm:$0xff] %vm3344_vm3, %v3339_v48  ;;  %3355 = vst.msk [vmem:[%s5319_s18 + $0x50] sm:$0xff] %vm3344_vm3, %v3338_v49  ;;  %v3711_v52 = vadd.f32 -14.703016, %v3308_v31  ;;  %v3710_v34 = vadd.f32 -14.703016, %v3307_v50 }
 0xb09   : > { %v3294_v12 = vpop.xlane.xlu0 %3293  ;;  %v3291_v13 = vpop.xlane.xlu1 %3290 }
 0xb0a   : > { %v3341_v53 = vadd.f32 %v3711_v52, %v5313_v62  ;;  %v3340_v56 = vadd.f32 %v3710_v34, %v5313_v62  ;;  %v3310_v4 = vmul.f32 -0.5, %v3294_v12  ;;  %v3309_v18 = vmul.f32 -0.5, %v3291_v13 }
 0xb0c   : > { %3358 = vst.msk [vmem:[%s5319_s18 + $0x68] sm:$0xff] %vm3344_vm3, %v3341_v53  ;;  %3357 = vst.msk [vmem:[%s5319_s18 + $0x60] sm:$0xff] %vm3344_vm3, %v3340_v56  ;;  %v3713_v58 = vadd.f32 -14.703016, %v3310_v4  ;;  %v3712_v1 = vadd.f32 -14.703016, %v3309_v18 }
 0xb0e   : > { %v3343_v59 = vadd.f32 %v3713_v58, %v5313_v62  ;;  %v3342_v60 = vadd.f32 %v3712_v1, %v5313_v62 }
 0xb10   : > { %3360 = vst.msk [vmem:[%s5319_s18 + $0x78] sm:$0xff] %vm3344_vm3, %v3343_v59  ;;  %3359 = vst.msk [vmem:[%s5319_s18 + $0x70] sm:$0xff] %vm3344_vm3, %v3342_v60 }
 0xb11 PF: > { %s20_s30 = sadd.s32 1, %s4424_s30  }
 0xb12   : > { %p17_p4 = scmp.ge.s32.totalorder %s20_s30, 6  }
 0xb14   :  { %19 = sbr.rel (!%p17_p4) target bundleno = 1 (0x1), region = 103 }

</bundles_post_ra>
